<compile_context>
chip_gen: v7x
topology: tpu7x:2x2x1
jax: 0.10.0
libtpu: 0.0.40
codegen_flags: <defaults>
</compile_context>

<pallas_src>
import jax
import jax.numpy as jnp
from jax.experimental import pallas as pl
from jax.experimental.pallas import tpu as pltpu

# ----------------------------- small model config -----------------------------
IMG = 16            # img_size
PATCH = 8           # patch_size
IN_CH = 3           # RGB input (timm ViT default in_chans=3)
DIM = 32            # embed_dim
DEPTH = 2           # number of transformer blocks
HEADS = 2           # num_heads
HEAD_DIM = DIM // HEADS
MLP_HIDDEN = int(DIM * 4.0)         # mlp_ratio = 4.0
N_PATCH = (IMG // PATCH) ** 2       # 4
TOKENS = N_PATCH + 1                # +1 CLS token
CPP = IN_CH * PATCH * PATCH         # flattened patch length (192)
EPS = 1e-6                          # timm LayerNorm eps
NEG_INF = -1e30                     # additive mask for cross-image attention pairs

# MXU operand dtype: bf16 operands + f32 accumulation (preferred_element_type).
# All vector math (LN / softmax / GELU / residuals) stays f32.
MXU_DTYPE = jnp.bfloat16


# --------------------------- static slab row layout ----------------------------
def _r8(n):  # round a row count up to the 8-sublane tile
    return ((n + 7) // 8) * 8


class _Alloc:
    """Tiny static row allocator: every piece starts on an 8-row boundary."""
    def __init__(self):
        self.n = 0

    def take(self, rows):
        off = self.n
        self.n += _r8(rows)
        return off


# Slab A: lane width = DIM (32).  Globals first, then per-block chunks.
_A = _Alloc()
A_PATCH_W = _A.take(CPP)        # [CPP, DIM]  patch-embed weight
A_TOK_BIAS = _A.take(TOKENS)    # [T, DIM]    cls_token+pos0 / pos+patch_b rows
A_NORM_G = _A.take(1)
A_NORM_B = _A.take(1)
A_PH_W1 = _A.take(DIM)
A_PH_B1 = _A.take(1)
A_PH_W2 = _A.take(DIM)
A_PH_B2 = _A.take(1)
A_BLK = []
for _d in range(DEPTH):
    A_BLK.append(dict(
        ln1g=_A.take(1), ln1b=_A.take(1),
        wproj=_A.take(DIM), bproj=_A.take(1),
        ln2g=_A.take(1), ln2b=_A.take(1),
        w2=_A.take(MLP_HIDDEN), b2=_A.take(1)))
A_ROWS = _A.n

# Slab B: lane width = 3*DIM (96) — fused QKV weight + bias per block.
_B = _Alloc()
B_BLK = [dict(wqkv=_B.take(DIM), bqkv=_B.take(1)) for _d in range(DEPTH)]
B_ROWS = _B.n

# Slab C: lane width = MLP_HIDDEN (128) — MLP fc1 weight + bias per block.
_C = _Alloc()
C_BLK = [dict(w1=_C.take(DIM), b1=_C.take(1)) for _d in range(DEPTH)]
C_ROWS = _C.n


# ------------------------------- kernel helpers --------------------------------
def _mm(a, b):
    """MXU matmul: bf16 operands, f32 accumulation."""
    return jnp.dot(a.astype(MXU_DTYPE), b.astype(MXU_DTYPE),
                   preferred_element_type=jnp.float32)


def _mm_nt(a, b):
    """a[M,K] @ b[N,K]^T -> [M,N]; contract last dims so no explicit transpose."""
    return jax.lax.dot_general(a.astype(MXU_DTYPE), b.astype(MXU_DTYPE),
                               (((1,), (1,)), ((), ())),
                               preferred_element_type=jnp.float32)


def _ln(x, g, b):
    """LayerNorm over the last axis (f32)."""
    mu = jnp.mean(x, axis=-1, keepdims=True)
    var = jnp.mean(jnp.square(x - mu), axis=-1, keepdims=True)
    return (x - mu) * jax.lax.rsqrt(var + EPS) * g + b


def _erf(x):
    """Abramowitz & Stegun 7.1.26 rational erf approximation, |err| <= 1.5e-7.
    Built only from exp/abs/div/where so it is guaranteed to lower in Mosaic."""
    a1, a2, a3, a4, a5 = 0.254829592, -0.284496736, 1.421413741, -1.453152027, 1.061405429
    p = 0.3275911
    ax = jnp.abs(x)
    t = 1.0 / (1.0 + p * ax)
    poly = ((((a5 * t + a4) * t + a3) * t + a2) * t + a1) * t
    y = 1.0 - poly * jnp.exp(-ax * ax)
    return jnp.where(x < 0, -y, y)


def _gelu(x):
    """Exact-erf GELU (matches nn.GELU default) to ~f32 precision."""
    return 0.5 * x * (1.0 + _erf(x * 0.7071067811865476))


def _softmax(s):
    s = s - jnp.max(s, axis=-1, keepdims=True)
    e = jnp.exp(s)
    return e / jnp.sum(e, axis=-1, keepdims=True)


def _row(ref, off):            # one parameter row as [1, W]
    return ref[pl.ds(off, 1), :]


def _rows(ref, off, n):        # a parameter matrix as [n, W]
    return ref[pl.ds(off, n), :]


# ------------------------------ fused ViT kernel -------------------------------
def _student_vit_kernel(patches_ref, abias_ref, a_ref, b_ref, c_ref,
                        tok_out_ref, proj_out_ref):
    f32 = jnp.float32
    bt = patches_ref.shape[0]          # B * TOKENS (static)
    batch = bt // TOKENS
    scale = HEAD_DIM ** -0.5

    abias = abias_ref[...]             # [BT, BT] block-diagonal additive mask

    # --- Patch embedding + CLS/pos token bias (broadcast in-kernel) ----------
    pw = _rows(a_ref, A_PATCH_W, CPP)                 # [CPP, D]
    tok_bias = _rows(a_ref, A_TOK_BIAS, TOKENS)       # [T, D]
    bias_full = jnp.concatenate([tok_bias] * batch, axis=0)           # [BT, D]
    x = _mm(patches_ref[...], pw) + bias_full                         # [BT, D]

    # --- Transformer blocks (unrolled; all weights VMEM-resident) ------------
    # At DEPTH=2 full unroll is right; if DEPTH grows, switch to lax.fori_loop
    # over stacked per-block slab chunks.
    for d in range(DEPTH):
        ao, bo, co = A_BLK[d], B_BLK[d], C_BLK[d]

        # Multi-head self-attention (pre-norm), fused QKV + 2-D masked scores.
        h = _ln(x, _row(a_ref, ao["ln1g"]), _row(a_ref, ao["ln1b"]))   # [BT, D]
        qkv = _mm(h, _rows(b_ref, bo["wqkv"], DIM)) + _row(b_ref, bo["bqkv"])  # [BT, 3D]

        attn = jnp.zeros((bt, DIM), f32)
        for hd in range(HEADS):
            q = qkv[:, hd * HEAD_DIM:(hd + 1) * HEAD_DIM]              # [BT, Hd]
            k = qkv[:, DIM + hd * HEAD_DIM: DIM + (hd + 1) * HEAD_DIM]
            v = qkv[:, 2 * DIM + hd * HEAD_DIM: 2 * DIM + (hd + 1) * HEAD_DIM]
            s = _mm_nt(q, k) * scale + abias                           # [BT, BT]
            p = _softmax(s)
            o = _mm(p, v)                                              # [BT, Hd]
            # concat(heads) @ Wproj == sum_h o_h @ Wproj[h*Hd:(h+1)*Hd, :]
            attn = attn + _mm(o, _rows(a_ref, ao["wproj"] + hd * HEAD_DIM, HEAD_DIM))
        x = x + attn + _row(a_ref, ao["bproj"])

        # MLP (pre-norm).
        h2 = _ln(x, _row(a_ref, ao["ln2g"]), _row(a_ref, ao["ln2b"]))
        h2 = _mm(h2, _rows(c_ref, co["w1"], DIM)) + _row(c_ref, co["b1"])     # [BT, H]
        h2 = _gelu(h2)
        h2 = _mm(h2, _rows(a_ref, ao["w2"], MLP_HIDDEN)) + _row(a_ref, ao["b2"])
        x = x + h2

    # --- Final LayerNorm + projection head (row-wise; wrapper slices CLS) ----
    xn = _ln(x, _row(a_ref, A_NORM_G), _row(a_ref, A_NORM_B))          # [BT, D]
    hh = _mm(xn, _rows(a_ref, A_PH_W1, DIM)) + _row(a_ref, A_PH_B1)
    hh = _gelu(hh)
    proj = _mm(hh, _rows(a_ref, A_PH_W2, DIM)) + _row(a_ref, A_PH_B2)  # [BT, D]

    tok_out_ref[...] = xn.astype(tok_out_ref.dtype)
    proj_out_ref[...] = proj.astype(proj_out_ref.dtype)


# ------------------------------------ glue -------------------------------------
def extract_patches(x):
    """NCHW [B,C,H,W] -> [B, N, C*P*P] patches, channel-major per patch
    (matches flattening a Conv2d weight [D, C, P, P])."""
    B, C, H, W = x.shape
    gh, gw = H // PATCH, W // PATCH
    x = x.reshape(B, C, gh, PATCH, gw, PATCH)
    x = x.transpose(0, 2, 4, 1, 3, 5)                                  # [B, gh, gw, C, P, P]
    return x.reshape(B, gh * gw, C * PATCH * PATCH)


def init_params(key):
    keys = jax.random.split(key, 8 + DEPTH)

    def nrm(k, shape, scale=0.02):
        return (scale * jax.random.normal(k, shape)).astype(jnp.float32)

    params = {
        "patch_w": nrm(keys[0], (CPP, DIM)),
        "patch_b": jnp.zeros((1, DIM), jnp.float32),
        "cls_token": nrm(keys[1], (1, DIM)),
        "pos_embed": nrm(keys[2], (TOKENS, DIM)),
        "norm_g": jnp.ones((1, DIM), jnp.float32),
        "norm_b": jnp.zeros((1, DIM), jnp.float32),
        "ph_w1": nrm(keys[3], (DIM, DIM)),
        "ph_b1": jnp.zeros((1, DIM), jnp.float32),
        "ph_w2": nrm(keys[4], (DIM, DIM)),
        "ph_b2": jnp.zeros((1, DIM), jnp.float32),
    }
    blocks = []
    for d in range(DEPTH):
        bk = jax.random.split(keys[5 + d], 4)
        blocks.append([
            jnp.ones((1, DIM), jnp.float32),          # ln1 gamma
            jnp.zeros((1, DIM), jnp.float32),         # ln1 beta
            nrm(bk[0], (DIM, 3 * DIM)),               # w_qkv  ([in, out] layout)
            jnp.zeros((1, 3 * DIM), jnp.float32),     # b_qkv
            nrm(bk[1], (DIM, DIM)),                   # w_proj
            jnp.zeros((1, DIM), jnp.float32),         # b_proj
            jnp.ones((1, DIM), jnp.float32),          # ln2 gamma
            jnp.zeros((1, DIM), jnp.float32),         # ln2 beta
            nrm(bk[2], (DIM, MLP_HIDDEN)),            # mlp fc1 w
            jnp.zeros((1, MLP_HIDDEN), jnp.float32),  # mlp fc1 b
            nrm(bk[3], (MLP_HIDDEN, DIM)),            # mlp fc2 w
            jnp.zeros((1, DIM), jnp.float32),         # mlp fc2 b
        ])
    params["blocks"] = blocks
    return params


def _pad8_rows(x):
    r = _r8(x.shape[0]) - x.shape[0]
    return x if r == 0 else jnp.pad(x, ((0, r), (0, 0)))


def pack_params(params):
    """Pack all parameters into 3 lane-width-grouped slabs (one-time layout plumbing).
    Piece order must match the static _Alloc offsets above."""
    tok_bias = jnp.concatenate(
        [params["cls_token"] + params["pos_embed"][:1],       # CLS row (no patch bias)
         params["pos_embed"][1:] + params["patch_b"]], axis=0)  # patch rows

    a_pieces = [params["patch_w"], tok_bias,
                params["norm_g"], params["norm_b"],
                params["ph_w1"], params["ph_b1"], params["ph_w2"], params["ph_b2"]]
    b_pieces, c_pieces = [], []
    for blk in params["blocks"]:
        (ln1g, ln1b, wqkv, bqkv, wproj, bproj, ln2g, ln2b, w1, b1, w2, b2) = blk
        a_pieces += [ln1g, ln1b, wproj, bproj, ln2g, ln2b, w2, b2]
        b_pieces += [wqkv, bqkv]
        c_pieces += [w1, b1]

    slab_a = jnp.concatenate([_pad8_rows(p) for p in a_pieces], axis=0)
    slab_b = jnp.concatenate([_pad8_rows(p) for p in b_pieces], axis=0)
    slab_c = jnp.concatenate([_pad8_rows(p) for p in c_pieces], axis=0)
    assert slab_a.shape == (A_ROWS, DIM)
    assert slab_b.shape == (B_ROWS, 3 * DIM)
    assert slab_c.shape == (C_ROWS, MLP_HIDDEN)
    return slab_a, slab_b, slab_c


def student_vit_forward(x, slabs):
    """Mirrors StudentViT.forward(x, return_features=True) with ONE pallas_call."""
    slab_a, slab_b, slab_c = slabs
    B = x.shape[0]
    bt = B * TOKENS

    # Wrapper-side layout plumbing (cheap XLA glue, fused under jit).
    patches = extract_patches(x)                                        # [B, N, CPP]
    patches_full = jnp.concatenate(
        [jnp.zeros((B, 1, CPP), x.dtype), patches], axis=1).reshape(bt, CPP)

    # Block-diagonal additive attention bias: cross-image (query, key) pairs -> -1e30.
    pos = jnp.arange(bt, dtype=jnp.int32) // TOKENS
    attn_bias = jnp.where(pos[:, None] == pos[None, :], 0.0, NEG_INF).astype(jnp.float32)

    args = (patches_full, attn_bias, slab_a, slab_b, slab_c)
    out_shape = (jax.ShapeDtypeStruct((bt, DIM), jnp.float32),          # post-norm tokens
                 jax.ShapeDtypeStruct((bt, DIM), jnp.float32))          # projection head (all rows)

    # Advisory cost estimate so XLA doesn't schedule the custom call pessimistically.
    flops = (2 * bt * CPP * DIM
             + DEPTH * (2 * bt * DIM * 3 * DIM                 # fused qkv
                        + HEADS * 2 * 2 * bt * bt * HEAD_DIM   # scores + attn*V
                        + 2 * bt * DIM * DIM                   # out proj
                        + 2 * 2 * bt * DIM * MLP_HIDDEN)       # mlp
             + 2 * 2 * bt * DIM * DIM)                         # projection head
    transcendentals = DEPTH * (bt * MLP_HIDDEN + HEADS * bt * bt) + bt * DIM
    bytes_accessed = (sum(int(a.size) * a.dtype.itemsize for a in args)
                      + 2 * bt * DIM * 4)

    vmem = pl.BlockSpec(memory_space=pltpu.MemorySpace.VMEM)
    tok_norm, proj_all = pl.pallas_call(
        _student_vit_kernel,
        out_shape=out_shape,
        in_specs=[vmem] * len(args),
        out_specs=(vmem, vmem),
        cost_estimate=pl.CostEstimate(flops=int(flops),
                                      transcendentals=int(transcendentals),
                                      bytes_accessed=int(bytes_accessed)),
    )(*args)

    tok_norm = tok_norm.reshape(B, TOKENS, DIM)
    proj_all = proj_all.reshape(B, TOKENS, DIM)
    return {
        "features": tok_norm[:, 0, :],             # [B, D]      post-norm CLS token
        "projected_features": proj_all[:, 0, :],   # [B, D]      Linear->GELU->Linear on CLS
        "patch_features": tok_norm[:, 1:, :],      # [B, T-1, D] post-norm patch tokens
    }


# ------------------------------------ main --------------------------------------
if __name__ == "__main__":
    key = jax.random.PRNGKey(0)
    k_x, k_p = jax.random.split(key)

    x = jax.random.normal(k_x, (2, IN_CH, IMG, IMG), dtype=jnp.float32)  # NCHW
    params = init_params(k_p)
    slabs = pack_params(params)            # one-time packing: 3 slabs replace ~33 refs

    fwd = jax.jit(student_vit_forward)
    outputs = fwd(x, slabs)
    jax.block_until_ready(outputs)

    assert outputs["features"].shape == (2, DIM)
    assert outputs["projected_features"].shape == (2, DIM)
    assert outputs["patch_features"].shape == (2, N_PATCH, DIM)
    print("KERNEL_OK")
</pallas_src>

<mosaic_0001>
module attributes {stable_mosaic.version = 11 : i64} {
  func.func @_student_vit_kernel(%arg0: memref<10x192xf32, #tpu.memory_space<vmem>>, %arg1: memref<10x10xf32, #tpu.memory_space<vmem>>, %arg2: memref<712x32xf32, #tpu.memory_space<vmem>>, %arg3: memref<80x96xf32, #tpu.memory_space<vmem>>, %arg4: memref<80x128xf32, #tpu.memory_space<vmem>>, %arg5: memref<10x32xf32, #tpu.memory_space<vmem>>, %arg6: memref<10x32xf32, #tpu.memory_space<vmem>>) attributes {dimension_semantics = [], scalar_prefetch = 0 : i64, scratch_operands = 0 : i64, tpu.core_type = #tpu.core_type<tc>} {
    %c0 = arith.constant 0 : index
    %c0_0 = arith.constant 0 : index
    %0 = vector.load %arg1[%c0, %c0_0] : memref<10x10xf32, #tpu.memory_space<vmem>>, vector<10x10xf32>
    %c0_1 = arith.constant 0 : index
    %c0_2 = arith.constant 0 : index
    %1 = vector.load %arg2[%c0_1, %c0_2] : memref<712x32xf32, #tpu.memory_space<vmem>>, vector<192x32xf32>
    %c192 = arith.constant 192 : index
    %c0_3 = arith.constant 0 : index
    %2 = vector.load %arg2[%c192, %c0_3] : memref<712x32xf32, #tpu.memory_space<vmem>>, vector<5x32xf32>
    %3 = tpu.concatenate %2, %2 in 0 : vector<5x32xf32>, vector<5x32xf32> -> vector<10x32xf32>
    %c0_4 = arith.constant 0 : index
    %c0_5 = arith.constant 0 : index
    %4 = vector.load %arg0[%c0_4, %c0_5] : memref<10x192xf32, #tpu.memory_space<vmem>>, vector<10x192xf32>
    %5 = arith.truncf %4 : vector<10x192xf32> to vector<10x192xbf16>
    %6 = arith.truncf %1 : vector<192x32xf32> to vector<192x32xbf16>
    %cst = arith.constant dense<0.000000e+00> : vector<10x32xf32>
    %7 = tpu.matmul %5, %6, %cst {dimension_numbers = #tpu.dot_dimension_numbers<[1], [0], [0], [1], [0, 0, 1, 1], [], []>} : vector<10x192xbf16>, vector<192x32xbf16>, vector<10x32xf32> -> vector<10x32xf32>
    %8 = arith.addf %7, %3 : vector<10x32xf32>
    %c296 = arith.constant 296 : index
    %c0_6 = arith.constant 0 : index
    %9 = vector.load %arg2[%c296, %c0_6] : memref<712x32xf32, #tpu.memory_space<vmem>>, vector<1x32xf32>
    %c304 = arith.constant 304 : index
    %c0_7 = arith.constant 0 : index
    %10 = vector.load %arg2[%c304, %c0_7] : memref<712x32xf32, #tpu.memory_space<vmem>>, vector<1x32xf32>
    %cst_8 = arith.constant dense<0.000000e+00> : vector<10xf32>
    %11 = vector.multi_reduction <add>, %8, %cst_8 [1] : vector<10x32xf32> to vector<10xf32>
    %12 = vector.shape_cast %11 : vector<10xf32> to vector<10x1xf32>
    %cst_9 = arith.constant 3.200000e+01 : f32
    %13 = vector.broadcast %cst_9 : f32 to vector<10x1xf32>
    %14 = arith.divf %12, %13 : vector<10x1xf32>
    %15 = vector.broadcast %14 : vector<10x1xf32> to vector<10x32xf32>
    %16 = arith.subf %8, %15 : vector<10x32xf32>
    %17 = arith.mulf %16, %16 : vector<10x32xf32>
    %cst_10 = arith.constant dense<0.000000e+00> : vector<10xf32>
    %18 = vector.multi_reduction <add>, %17, %cst_10 [1] : vector<10x32xf32> to vector<10xf32>
    %19 = vector.shape_cast %18 : vector<10xf32> to vector<10x1xf32>
    %cst_11 = arith.constant 3.200000e+01 : f32
    %20 = vector.broadcast %cst_11 : f32 to vector<10x1xf32>
    %21 = arith.divf %19, %20 : vector<10x1xf32>
    %22 = vector.broadcast %14 : vector<10x1xf32> to vector<10x32xf32>
    %23 = arith.subf %8, %22 : vector<10x32xf32>
    %cst_12 = arith.constant 9.99999997E-7 : f32
    %24 = vector.broadcast %cst_12 : f32 to vector<10x1xf32>
    %25 = arith.addf %21, %24 : vector<10x1xf32>
    %26 = math.rsqrt %25 : vector<10x1xf32>
    %27 = vector.broadcast %26 : vector<10x1xf32> to vector<10x32xf32>
    %28 = arith.mulf %23, %27 : vector<10x32xf32>
    %29 = vector.broadcast %9 : vector<1x32xf32> to vector<10x32xf32>
    %30 = arith.mulf %28, %29 : vector<10x32xf32>
    %31 = vector.broadcast %10 : vector<1x32xf32> to vector<10x32xf32>
    %32 = arith.addf %30, %31 : vector<10x32xf32>
    %c0_13 = arith.constant 0 : index
    %c0_14 = arith.constant 0 : index
    %33 = vector.load %arg3[%c0_13, %c0_14] : memref<80x96xf32, #tpu.memory_space<vmem>>, vector<32x96xf32>
    %34 = arith.truncf %32 : vector<10x32xf32> to vector<10x32xbf16>
    %35 = arith.truncf %33 : vector<32x96xf32> to vector<32x96xbf16>
    %cst_15 = arith.constant dense<0.000000e+00> : vector<10x96xf32>
    %36 = tpu.matmul %34, %35, %cst_15 {dimension_numbers = #tpu.dot_dimension_numbers<[1], [0], [0], [1], [0, 0, 1, 1], [], []>} : vector<10x32xbf16>, vector<32x96xbf16>, vector<10x96xf32> -> vector<10x96xf32>
    %c32 = arith.constant 32 : index
    %c0_16 = arith.constant 0 : index
    %37 = vector.load %arg3[%c32, %c0_16] : memref<80x96xf32, #tpu.memory_space<vmem>>, vector<1x96xf32>
    %38 = vector.broadcast %37 : vector<1x96xf32> to vector<10x96xf32>
    %39 = arith.addf %36, %38 : vector<10x96xf32>
    %cst_17 = arith.constant 0.000000e+00 : f32
    %40 = vector.broadcast %cst_17 : f32 to vector<10x32xf32>
    %41 = vector.extract_strided_slice %39 {offsets = [0, 0], sizes = [10, 16], strides = [1, 1]} : vector<10x96xf32> to vector<10x16xf32>
    %42 = vector.extract_strided_slice %39 {offsets = [0, 32], sizes = [10, 16], strides = [1, 1]} : vector<10x96xf32> to vector<10x16xf32>
    %43 = vector.extract_strided_slice %39 {offsets = [0, 64], sizes = [10, 16], strides = [1, 1]} : vector<10x96xf32> to vector<10x16xf32>
    %44 = arith.truncf %41 : vector<10x16xf32> to vector<10x16xbf16>
    %45 = arith.truncf %42 : vector<10x16xf32> to vector<10x16xbf16>
    %cst_18 = arith.constant dense<0.000000e+00> : vector<10x10xf32>
    %46 = tpu.matmul %44, %45, %cst_18 {dimension_numbers = #tpu.dot_dimension_numbers<[1], [1], [0], [0], [0, 0, 1, 0], [], []>} : vector<10x16xbf16>, vector<10x16xbf16>, vector<10x10xf32> -> vector<10x10xf32>
    %cst_19 = arith.constant 2.500000e-01 : f32
    %47 = vector.broadcast %cst_19 : f32 to vector<10x10xf32>
    %48 = arith.mulf %46, %47 : vector<10x10xf32>
    %49 = arith.addf %48, %0 : vector<10x10xf32>
    %cst_20 = arith.constant dense<0xFF800000> : vector<10xf32>
    %50 = vector.multi_reduction <maximumf>, %49, %cst_20 [1] : vector<10x10xf32> to vector<10xf32>
    %51 = vector.shape_cast %50 : vector<10xf32> to vector<10x1xf32>
    %52 = vector.broadcast %51 : vector<10x1xf32> to vector<10x10xf32>
    %53 = arith.subf %49, %52 : vector<10x10xf32>
    %54 = math.exp %53 : vector<10x10xf32>
    %cst_21 = arith.constant dense<0.000000e+00> : vector<10xf32>
    %55 = vector.multi_reduction <add>, %54, %cst_21 [1] : vector<10x10xf32> to vector<10xf32>
    %56 = vector.shape_cast %55 : vector<10xf32> to vector<10x1xf32>
    %57 = vector.broadcast %56 : vector<10x1xf32> to vector<10x10xf32>
    %58 = arith.divf %54, %57 : vector<10x10xf32>
    %59 = arith.truncf %58 : vector<10x10xf32> to vector<10x10xbf16>
    %60 = arith.truncf %43 : vector<10x16xf32> to vector<10x16xbf16>
    %cst_22 = arith.constant dense<0.000000e+00> : vector<10x16xf32>
    %61 = tpu.matmul %59, %60, %cst_22 {dimension_numbers = #tpu.dot_dimension_numbers<[1], [0], [0], [1], [0, 0, 1, 1], [], []>} : vector<10x10xbf16>, vector<10x16xbf16>, vector<10x16xf32> -> vector<10x16xf32>
    %c312 = arith.constant 312 : index
    %c0_23 = arith.constant 0 : index
    %62 = vector.load %arg2[%c312, %c0_23] : memref<712x32xf32, #tpu.memory_space<vmem>>, vector<16x32xf32>
    %63 = arith.truncf %61 : vector<10x16xf32> to vector<10x16xbf16>
    %64 = arith.truncf %62 : vector<16x32xf32> to vector<16x32xbf16>
    %cst_24 = arith.constant dense<0.000000e+00> : vector<10x32xf32>
    %65 = tpu.matmul %63, %64, %cst_24 {dimension_numbers = #tpu.dot_dimension_numbers<[1], [0], [0], [1], [0, 0, 1, 1], [], []>} : vector<10x16xbf16>, vector<16x32xbf16>, vector<10x32xf32> -> vector<10x32xf32>
    %66 = arith.addf %40, %65 : vector<10x32xf32>
    %67 = vector.extract_strided_slice %39 {offsets = [0, 16], sizes = [10, 16], strides = [1, 1]} : vector<10x96xf32> to vector<10x16xf32>
    %68 = vector.extract_strided_slice %39 {offsets = [0, 48], sizes = [10, 16], strides = [1, 1]} : vector<10x96xf32> to vector<10x16xf32>
    %69 = vector.extract_strided_slice %39 {offsets = [0, 80], sizes = [10, 16], strides = [1, 1]} : vector<10x96xf32> to vector<10x16xf32>
    %70 = arith.truncf %67 : vector<10x16xf32> to vector<10x16xbf16>
    %71 = arith.truncf %68 : vector<10x16xf32> to vector<10x16xbf16>
    %cst_25 = arith.constant dense<0.000000e+00> : vector<10x10xf32>
    %72 = tpu.matmul %70, %71, %cst_25 {dimension_numbers = #tpu.dot_dimension_numbers<[1], [1], [0], [0], [0, 0, 1, 0], [], []>} : vector<10x16xbf16>, vector<10x16xbf16>, vector<10x10xf32> -> vector<10x10xf32>
    %cst_26 = arith.constant 2.500000e-01 : f32
    %73 = vector.broadcast %cst_26 : f32 to vector<10x10xf32>
    %74 = arith.mulf %72, %73 : vector<10x10xf32>
    %75 = arith.addf %74, %0 : vector<10x10xf32>
    %cst_27 = arith.constant dense<0xFF800000> : vector<10xf32>
    %76 = vector.multi_reduction <maximumf>, %75, %cst_27 [1] : vector<10x10xf32> to vector<10xf32>
    %77 = vector.shape_cast %76 : vector<10xf32> to vector<10x1xf32>
    %78 = vector.broadcast %77 : vector<10x1xf32> to vector<10x10xf32>
    %79 = arith.subf %75, %78 : vector<10x10xf32>
    %80 = math.exp %79 : vector<10x10xf32>
    %cst_28 = arith.constant dense<0.000000e+00> : vector<10xf32>
    %81 = vector.multi_reduction <add>, %80, %cst_28 [1] : vector<10x10xf32> to vector<10xf32>
    %82 = vector.shape_cast %81 : vector<10xf32> to vector<10x1xf32>
    %83 = vector.broadcast %82 : vector<10x1xf32> to vector<10x10xf32>
    %84 = arith.divf %80, %83 : vector<10x10xf32>
    %85 = arith.truncf %84 : vector<10x10xf32> to vector<10x10xbf16>
    %86 = arith.truncf %69 : vector<10x16xf32> to vector<10x16xbf16>
    %cst_29 = arith.constant dense<0.000000e+00> : vector<10x16xf32>
    %87 = tpu.matmul %85, %86, %cst_29 {dimension_numbers = #tpu.dot_dimension_numbers<[1], [0], [0], [1], [0, 0, 1, 1], [], []>} : vector<10x10xbf16>, vector<10x16xbf16>, vector<10x16xf32> -> vector<10x16xf32>
    %c328 = arith.constant 328 : index
    %c0_30 = arith.constant 0 : index
    %88 = vector.load %arg2[%c328, %c0_30] : memref<712x32xf32, #tpu.memory_space<vmem>>, vector<16x32xf32>
    %89 = arith.truncf %87 : vector<10x16xf32> to vector<10x16xbf16>
    %90 = arith.truncf %88 : vector<16x32xf32> to vector<16x32xbf16>
    %cst_31 = arith.constant dense<0.000000e+00> : vector<10x32xf32>
    %91 = tpu.matmul %89, %90, %cst_31 {dimension_numbers = #tpu.dot_dimension_numbers<[1], [0], [0], [1], [0, 0, 1, 1], [], []>} : vector<10x16xbf16>, vector<16x32xbf16>, vector<10x32xf32> -> vector<10x32xf32>
    %92 = arith.addf %66, %91 : vector<10x32xf32>
    %93 = arith.addf %8, %92 : vector<10x32xf32>
    %c344 = arith.constant 344 : index
    %c0_32 = arith.constant 0 : index
    %94 = vector.load %arg2[%c344, %c0_32] : memref<712x32xf32, #tpu.memory_space<vmem>>, vector<1x32xf32>
    %95 = vector.broadcast %94 : vector<1x32xf32> to vector<10x32xf32>
    %96 = arith.addf %93, %95 : vector<10x32xf32>
    %c352 = arith.constant 352 : index
    %c0_33 = arith.constant 0 : index
    %97 = vector.load %arg2[%c352, %c0_33] : memref<712x32xf32, #tpu.memory_space<vmem>>, vector<1x32xf32>
    %c360 = arith.constant 360 : index
    %c0_34 = arith.constant 0 : index
    %98 = vector.load %arg2[%c360, %c0_34] : memref<712x32xf32, #tpu.memory_space<vmem>>, vector<1x32xf32>
    %cst_35 = arith.constant dense<0.000000e+00> : vector<10xf32>
    %99 = vector.multi_reduction <add>, %96, %cst_35 [1] : vector<10x32xf32> to vector<10xf32>
    %100 = vector.shape_cast %99 : vector<10xf32> to vector<10x1xf32>
    %cst_36 = arith.constant 3.200000e+01 : f32
    %101 = vector.broadcast %cst_36 : f32 to vector<10x1xf32>
    %102 = arith.divf %100, %101 : vector<10x1xf32>
    %103 = vector.broadcast %102 : vector<10x1xf32> to vector<10x32xf32>
    %104 = arith.subf %96, %103 : vector<10x32xf32>
    %105 = arith.mulf %104, %104 : vector<10x32xf32>
    %cst_37 = arith.constant dense<0.000000e+00> : vector<10xf32>
    %106 = vector.multi_reduction <add>, %105, %cst_37 [1] : vector<10x32xf32> to vector<10xf32>
    %107 = vector.shape_cast %106 : vector<10xf32> to vector<10x1xf32>
    %cst_38 = arith.constant 3.200000e+01 : f32
    %108 = vector.broadcast %cst_38 : f32 to vector<10x1xf32>
    %109 = arith.divf %107, %108 : vector<10x1xf32>
    %110 = vector.broadcast %102 : vector<10x1xf32> to vector<10x32xf32>
    %111 = arith.subf %96, %110 : vector<10x32xf32>
    %cst_39 = arith.constant 9.99999997E-7 : f32
    %112 = vector.broadcast %cst_39 : f32 to vector<10x1xf32>
    %113 = arith.addf %109, %112 : vector<10x1xf32>
    %114 = math.rsqrt %113 : vector<10x1xf32>
    %115 = vector.broadcast %114 : vector<10x1xf32> to vector<10x32xf32>
    %116 = arith.mulf %111, %115 : vector<10x32xf32>
    %117 = vector.broadcast %97 : vector<1x32xf32> to vector<10x32xf32>
    %118 = arith.mulf %116, %117 : vector<10x32xf32>
    %119 = vector.broadcast %98 : vector<1x32xf32> to vector<10x32xf32>
    %120 = arith.addf %118, %119 : vector<10x32xf32>
    %c0_40 = arith.constant 0 : index
    %c0_41 = arith.constant 0 : index
    %121 = vector.load %arg4[%c0_40, %c0_41] : memref<80x128xf32, #tpu.memory_space<vmem>>, vector<32x128xf32>
    %122 = arith.truncf %120 : vector<10x32xf32> to vector<10x32xbf16>
    %123 = arith.truncf %121 : vector<32x128xf32> to vector<32x128xbf16>
    %cst_42 = arith.constant dense<0.000000e+00> : vector<10x128xf32>
    %124 = tpu.matmul %122, %123, %cst_42 {dimension_numbers = #tpu.dot_dimension_numbers<[1], [0], [0], [1], [0, 0, 1, 1], [], []>} : vector<10x32xbf16>, vector<32x128xbf16>, vector<10x128xf32> -> vector<10x128xf32>
    %c32_43 = arith.constant 32 : index
    %c0_44 = arith.constant 0 : index
    %125 = vector.load %arg4[%c32_43, %c0_44] : memref<80x128xf32, #tpu.memory_space<vmem>>, vector<1x128xf32>
    %126 = vector.broadcast %125 : vector<1x128xf32> to vector<10x128xf32>
    %127 = arith.addf %124, %126 : vector<10x128xf32>
    %cst_45 = arith.constant 5.000000e-01 : f32
    %128 = vector.broadcast %cst_45 : f32 to vector<10x128xf32>
    %129 = arith.mulf %128, %127 : vector<10x128xf32>
    %cst_46 = arith.constant 0.707106769 : f32
    %130 = vector.broadcast %cst_46 : f32 to vector<10x128xf32>
    %131 = arith.mulf %127, %130 : vector<10x128xf32>
    %132 = math.absf %131 : vector<10x128xf32>
    %cst_47 = arith.constant 0.327591091 : f32
    %133 = vector.broadcast %cst_47 : f32 to vector<10x128xf32>
    %134 = arith.mulf %133, %132 : vector<10x128xf32>
    %cst_48 = arith.constant 1.000000e+00 : f32
    %135 = vector.broadcast %cst_48 : f32 to vector<10x128xf32>
    %136 = arith.addf %135, %134 : vector<10x128xf32>
    %cst_49 = arith.constant 1.000000e+00 : f32
    %137 = vector.broadcast %cst_49 : f32 to vector<10x128xf32>
    %138 = arith.divf %137, %136 : vector<10x128xf32>
    %cst_50 = arith.constant 1.06140542 : f32
    %139 = vector.broadcast %cst_50 : f32 to vector<10x128xf32>
    %140 = arith.mulf %139, %138 : vector<10x128xf32>
    %cst_51 = arith.constant -1.45315206 : f32
    %141 = vector.broadcast %cst_51 : f32 to vector<10x128xf32>
    %142 = arith.addf %140, %141 : vector<10x128xf32>
    %143 = arith.mulf %142, %138 : vector<10x128xf32>
    %cst_52 = arith.constant 1.42141378 : f32
    %144 = vector.broadcast %cst_52 : f32 to vector<10x128xf32>
    %145 = arith.addf %143, %144 : vector<10x128xf32>
    %146 = arith.mulf %145, %138 : vector<10x128xf32>
    %cst_53 = arith.constant -0.284496725 : f32
    %147 = vector.broadcast %cst_53 : f32 to vector<10x128xf32>
    %148 = arith.addf %146, %147 : vector<10x128xf32>
    %149 = arith.mulf %148, %138 : vector<10x128xf32>
    %cst_54 = arith.constant 0.254829586 : f32
    %150 = vector.broadcast %cst_54 : f32 to vector<10x128xf32>
    %151 = arith.addf %149, %150 : vector<10x128xf32>
    %152 = arith.mulf %151, %138 : vector<10x128xf32>
    %cst_55 = arith.constant 0.000000e+00 : f32
    %153 = vector.broadcast %cst_55 : f32 to vector<10x128xf32>
    %154 = arith.subf %153, %132 : vector<10x128xf32>
    %155 = arith.mulf %154, %132 : vector<10x128xf32>
    %156 = math.exp %155 : vector<10x128xf32>
    %157 = arith.mulf %152, %156 : vector<10x128xf32>
    %cst_56 = arith.constant 1.000000e+00 : f32
    %158 = vector.broadcast %cst_56 : f32 to vector<10x128xf32>
    %159 = arith.subf %158, %157 : vector<10x128xf32>
    %cst_57 = arith.constant 0.000000e+00 : f32
    %160 = vector.broadcast %cst_57 : f32 to vector<10x128xf32>
    %161 = arith.cmpf olt, %131, %160 : vector<10x128xf32>
    %cst_58 = arith.constant 0.000000e+00 : f32
    %162 = vector.broadcast %cst_58 : f32 to vector<10x128xf32>
    %163 = arith.subf %162, %159 : vector<10x128xf32>
    %164 = arith.select %161, %163, %159 : vector<10x128xi1>, vector<10x128xf32>
    %cst_59 = arith.constant 1.000000e+00 : f32
    %165 = vector.broadcast %cst_59 : f32 to vector<10x128xf32>
    %166 = arith.addf %165, %164 : vector<10x128xf32>
    %167 = arith.mulf %129, %166 : vector<10x128xf32>
    %c368 = arith.constant 368 : index
    %c0_60 = arith.constant 0 : index
    %168 = vector.load %arg2[%c368, %c0_60] : memref<712x32xf32, #tpu.memory_space<vmem>>, vector<128x32xf32>
    %169 = arith.truncf %167 : vector<10x128xf32> to vector<10x128xbf16>
    %170 = arith.truncf %168 : vector<128x32xf32> to vector<128x32xbf16>
    %cst_61 = arith.constant dense<0.000000e+00> : vector<10x32xf32>
    %171 = tpu.matmul %169, %170, %cst_61 {dimension_numbers = #tpu.dot_dimension_numbers<[1], [0], [0], [1], [0, 0, 1, 1], [], []>} : vector<10x128xbf16>, vector<128x32xbf16>, vector<10x32xf32> -> vector<10x32xf32>
    %c496 = arith.constant 496 : index
    %c0_62 = arith.constant 0 : index
    %172 = vector.load %arg2[%c496, %c0_62] : memref<712x32xf32, #tpu.memory_space<vmem>>, vector<1x32xf32>
    %173 = vector.broadcast %172 : vector<1x32xf32> to vector<10x32xf32>
    %174 = arith.addf %171, %173 : vector<10x32xf32>
    %175 = arith.addf %96, %174 : vector<10x32xf32>
    %c504 = arith.constant 504 : index
    %c0_63 = arith.constant 0 : index
    %176 = vector.load %arg2[%c504, %c0_63] : memref<712x32xf32, #tpu.memory_space<vmem>>, vector<1x32xf32>
    %c512 = arith.constant 512 : index
    %c0_64 = arith.constant 0 : index
    %177 = vector.load %arg2[%c512, %c0_64] : memref<712x32xf32, #tpu.memory_space<vmem>>, vector<1x32xf32>
    %cst_65 = arith.constant dense<0.000000e+00> : vector<10xf32>
    %178 = vector.multi_reduction <add>, %175, %cst_65 [1] : vector<10x32xf32> to vector<10xf32>
    %179 = vector.shape_cast %178 : vector<10xf32> to vector<10x1xf32>
    %cst_66 = arith.constant 3.200000e+01 : f32
    %180 = vector.broadcast %cst_66 : f32 to vector<10x1xf32>
    %181 = arith.divf %179, %180 : vector<10x1xf32>
    %182 = vector.broadcast %181 : vector<10x1xf32> to vector<10x32xf32>
    %183 = arith.subf %175, %182 : vector<10x32xf32>
    %184 = arith.mulf %183, %183 : vector<10x32xf32>
    %cst_67 = arith.constant dense<0.000000e+00> : vector<10xf32>
    %185 = vector.multi_reduction <add>, %184, %cst_67 [1] : vector<10x32xf32> to vector<10xf32>
    %186 = vector.shape_cast %185 : vector<10xf32> to vector<10x1xf32>
    %cst_68 = arith.constant 3.200000e+01 : f32
    %187 = vector.broadcast %cst_68 : f32 to vector<10x1xf32>
    %188 = arith.divf %186, %187 : vector<10x1xf32>
    %189 = vector.broadcast %181 : vector<10x1xf32> to vector<10x32xf32>
    %190 = arith.subf %175, %189 : vector<10x32xf32>
    %cst_69 = arith.constant 9.99999997E-7 : f32
    %191 = vector.broadcast %cst_69 : f32 to vector<10x1xf32>
    %192 = arith.addf %188, %191 : vector<10x1xf32>
    %193 = math.rsqrt %192 : vector<10x1xf32>
    %194 = vector.broadcast %193 : vector<10x1xf32> to vector<10x32xf32>
    %195 = arith.mulf %190, %194 : vector<10x32xf32>
    %196 = vector.broadcast %176 : vector<1x32xf32> to vector<10x32xf32>
    %197 = arith.mulf %195, %196 : vector<10x32xf32>
    %198 = vector.broadcast %177 : vector<1x32xf32> to vector<10x32xf32>
    %199 = arith.addf %197, %198 : vector<10x32xf32>
    %c40 = arith.constant 40 : index
    %c0_70 = arith.constant 0 : index
    %200 = vector.load %arg3[%c40, %c0_70] : memref<80x96xf32, #tpu.memory_space<vmem>>, vector<32x96xf32>
    %201 = arith.truncf %199 : vector<10x32xf32> to vector<10x32xbf16>
    %202 = arith.truncf %200 : vector<32x96xf32> to vector<32x96xbf16>
    %cst_71 = arith.constant dense<0.000000e+00> : vector<10x96xf32>
    %203 = tpu.matmul %201, %202, %cst_71 {dimension_numbers = #tpu.dot_dimension_numbers<[1], [0], [0], [1], [0, 0, 1, 1], [], []>} : vector<10x32xbf16>, vector<32x96xbf16>, vector<10x96xf32> -> vector<10x96xf32>
    %c72 = arith.constant 72 : index
    %c0_72 = arith.constant 0 : index
    %204 = vector.load %arg3[%c72, %c0_72] : memref<80x96xf32, #tpu.memory_space<vmem>>, vector<1x96xf32>
    %205 = vector.broadcast %204 : vector<1x96xf32> to vector<10x96xf32>
    %206 = arith.addf %203, %205 : vector<10x96xf32>
    %cst_73 = arith.constant 0.000000e+00 : f32
    %207 = vector.broadcast %cst_73 : f32 to vector<10x32xf32>
    %208 = vector.extract_strided_slice %206 {offsets = [0, 0], sizes = [10, 16], strides = [1, 1]} : vector<10x96xf32> to vector<10x16xf32>
    %209 = vector.extract_strided_slice %206 {offsets = [0, 32], sizes = [10, 16], strides = [1, 1]} : vector<10x96xf32> to vector<10x16xf32>
    %210 = vector.extract_strided_slice %206 {offsets = [0, 64], sizes = [10, 16], strides = [1, 1]} : vector<10x96xf32> to vector<10x16xf32>
    %211 = arith.truncf %208 : vector<10x16xf32> to vector<10x16xbf16>
    %212 = arith.truncf %209 : vector<10x16xf32> to vector<10x16xbf16>
    %cst_74 = arith.constant dense<0.000000e+00> : vector<10x10xf32>
    %213 = tpu.matmul %211, %212, %cst_74 {dimension_numbers = #tpu.dot_dimension_numbers<[1], [1], [0], [0], [0, 0, 1, 0], [], []>} : vector<10x16xbf16>, vector<10x16xbf16>, vector<10x10xf32> -> vector<10x10xf32>
    %cst_75 = arith.constant 2.500000e-01 : f32
    %214 = vector.broadcast %cst_75 : f32 to vector<10x10xf32>
    %215 = arith.mulf %213, %214 : vector<10x10xf32>
    %216 = arith.addf %215, %0 : vector<10x10xf32>
    %cst_76 = arith.constant dense<0xFF800000> : vector<10xf32>
    %217 = vector.multi_reduction <maximumf>, %216, %cst_76 [1] : vector<10x10xf32> to vector<10xf32>
    %218 = vector.shape_cast %217 : vector<10xf32> to vector<10x1xf32>
    %219 = vector.broadcast %218 : vector<10x1xf32> to vector<10x10xf32>
    %220 = arith.subf %216, %219 : vector<10x10xf32>
    %221 = math.exp %220 : vector<10x10xf32>
    %cst_77 = arith.constant dense<0.000000e+00> : vector<10xf32>
    %222 = vector.multi_reduction <add>, %221, %cst_77 [1] : vector<10x10xf32> to vector<10xf32>
    %223 = vector.shape_cast %222 : vector<10xf32> to vector<10x1xf32>
    %224 = vector.broadcast %223 : vector<10x1xf32> to vector<10x10xf32>
    %225 = arith.divf %221, %224 : vector<10x10xf32>
    %226 = arith.truncf %225 : vector<10x10xf32> to vector<10x10xbf16>
    %227 = arith.truncf %210 : vector<10x16xf32> to vector<10x16xbf16>
    %cst_78 = arith.constant dense<0.000000e+00> : vector<10x16xf32>
    %228 = tpu.matmul %226, %227, %cst_78 {dimension_numbers = #tpu.dot_dimension_numbers<[1], [0], [0], [1], [0, 0, 1, 1], [], []>} : vector<10x10xbf16>, vector<10x16xbf16>, vector<10x16xf32> -> vector<10x16xf32>
    %c520 = arith.constant 520 : index
    %c0_79 = arith.constant 0 : index
    %229 = vector.load %arg2[%c520, %c0_79] : memref<712x32xf32, #tpu.memory_space<vmem>>, vector<16x32xf32>
    %230 = arith.truncf %228 : vector<10x16xf32> to vector<10x16xbf16>
    %231 = arith.truncf %229 : vector<16x32xf32> to vector<16x32xbf16>
    %cst_80 = arith.constant dense<0.000000e+00> : vector<10x32xf32>
    %232 = tpu.matmul %230, %231, %cst_80 {dimension_numbers = #tpu.dot_dimension_numbers<[1], [0], [0], [1], [0, 0, 1, 1], [], []>} : vector<10x16xbf16>, vector<16x32xbf16>, vector<10x32xf32> -> vector<10x32xf32>
    %233 = arith.addf %207, %232 : vector<10x32xf32>
    %234 = vector.extract_strided_slice %206 {offsets = [0, 16], sizes = [10, 16], strides = [1, 1]} : vector<10x96xf32> to vector<10x16xf32>
    %235 = vector.extract_strided_slice %206 {offsets = [0, 48], sizes = [10, 16], strides = [1, 1]} : vector<10x96xf32> to vector<10x16xf32>
    %236 = vector.extract_strided_slice %206 {offsets = [0, 80], sizes = [10, 16], strides = [1, 1]} : vector<10x96xf32> to vector<10x16xf32>
    %237 = arith.truncf %234 : vector<10x16xf32> to vector<10x16xbf16>
    %238 = arith.truncf %235 : vector<10x16xf32> to vector<10x16xbf16>
    %cst_81 = arith.constant dense<0.000000e+00> : vector<10x10xf32>
    %239 = tpu.matmul %237, %238, %cst_81 {dimension_numbers = #tpu.dot_dimension_numbers<[1], [1], [0], [0], [0, 0, 1, 0], [], []>} : vector<10x16xbf16>, vector<10x16xbf16>, vector<10x10xf32> -> vector<10x10xf32>
    %cst_82 = arith.constant 2.500000e-01 : f32
    %240 = vector.broadcast %cst_82 : f32 to vector<10x10xf32>
    %241 = arith.mulf %239, %240 : vector<10x10xf32>
    %242 = arith.addf %241, %0 : vector<10x10xf32>
    %cst_83 = arith.constant dense<0xFF800000> : vector<10xf32>
    %243 = vector.multi_reduction <maximumf>, %242, %cst_83 [1] : vector<10x10xf32> to vector<10xf32>
    %244 = vector.shape_cast %243 : vector<10xf32> to vector<10x1xf32>
    %245 = vector.broadcast %244 : vector<10x1xf32> to vector<10x10xf32>
    %246 = arith.subf %242, %245 : vector<10x10xf32>
    %247 = math.exp %246 : vector<10x10xf32>
    %cst_84 = arith.constant dense<0.000000e+00> : vector<10xf32>
    %248 = vector.multi_reduction <add>, %247, %cst_84 [1] : vector<10x10xf32> to vector<10xf32>
    %249 = vector.shape_cast %248 : vector<10xf32> to vector<10x1xf32>
    %250 = vector.broadcast %249 : vector<10x1xf32> to vector<10x10xf32>
    %251 = arith.divf %247, %250 : vector<10x10xf32>
    %252 = arith.truncf %251 : vector<10x10xf32> to vector<10x10xbf16>
    %253 = arith.truncf %236 : vector<10x16xf32> to vector<10x16xbf16>
    %cst_85 = arith.constant dense<0.000000e+00> : vector<10x16xf32>
    %254 = tpu.matmul %252, %253, %cst_85 {dimension_numbers = #tpu.dot_dimension_numbers<[1], [0], [0], [1], [0, 0, 1, 1], [], []>} : vector<10x10xbf16>, vector<10x16xbf16>, vector<10x16xf32> -> vector<10x16xf32>
    %c536 = arith.constant 536 : index
    %c0_86 = arith.constant 0 : index
    %255 = vector.load %arg2[%c536, %c0_86] : memref<712x32xf32, #tpu.memory_space<vmem>>, vector<16x32xf32>
    %256 = arith.truncf %254 : vector<10x16xf32> to vector<10x16xbf16>
    %257 = arith.truncf %255 : vector<16x32xf32> to vector<16x32xbf16>
    %cst_87 = arith.constant dense<0.000000e+00> : vector<10x32xf32>
    %258 = tpu.matmul %256, %257, %cst_87 {dimension_numbers = #tpu.dot_dimension_numbers<[1], [0], [0], [1], [0, 0, 1, 1], [], []>} : vector<10x16xbf16>, vector<16x32xbf16>, vector<10x32xf32> -> vector<10x32xf32>
    %259 = arith.addf %233, %258 : vector<10x32xf32>
    %260 = arith.addf %175, %259 : vector<10x32xf32>
    %c552 = arith.constant 552 : index
    %c0_88 = arith.constant 0 : index
    %261 = vector.load %arg2[%c552, %c0_88] : memref<712x32xf32, #tpu.memory_space<vmem>>, vector<1x32xf32>
    %262 = vector.broadcast %261 : vector<1x32xf32> to vector<10x32xf32>
    %263 = arith.addf %260, %262 : vector<10x32xf32>
    %c560 = arith.constant 560 : index
    %c0_89 = arith.constant 0 : index
    %264 = vector.load %arg2[%c560, %c0_89] : memref<712x32xf32, #tpu.memory_space<vmem>>, vector<1x32xf32>
    %c568 = arith.constant 568 : index
    %c0_90 = arith.constant 0 : index
    %265 = vector.load %arg2[%c568, %c0_90] : memref<712x32xf32, #tpu.memory_space<vmem>>, vector<1x32xf32>
    %cst_91 = arith.constant dense<0.000000e+00> : vector<10xf32>
    %266 = vector.multi_reduction <add>, %263, %cst_91 [1] : vector<10x32xf32> to vector<10xf32>
    %267 = vector.shape_cast %266 : vector<10xf32> to vector<10x1xf32>
    %cst_92 = arith.constant 3.200000e+01 : f32
    %268 = vector.broadcast %cst_92 : f32 to vector<10x1xf32>
    %269 = arith.divf %267, %268 : vector<10x1xf32>
    %270 = vector.broadcast %269 : vector<10x1xf32> to vector<10x32xf32>
    %271 = arith.subf %263, %270 : vector<10x32xf32>
    %272 = arith.mulf %271, %271 : vector<10x32xf32>
    %cst_93 = arith.constant dense<0.000000e+00> : vector<10xf32>
    %273 = vector.multi_reduction <add>, %272, %cst_93 [1] : vector<10x32xf32> to vector<10xf32>
    %274 = vector.shape_cast %273 : vector<10xf32> to vector<10x1xf32>
    %cst_94 = arith.constant 3.200000e+01 : f32
    %275 = vector.broadcast %cst_94 : f32 to vector<10x1xf32>
    %276 = arith.divf %274, %275 : vector<10x1xf32>
    %277 = vector.broadcast %269 : vector<10x1xf32> to vector<10x32xf32>
    %278 = arith.subf %263, %277 : vector<10x32xf32>
    %cst_95 = arith.constant 9.99999997E-7 : f32
    %279 = vector.broadcast %cst_95 : f32 to vector<10x1xf32>
    %280 = arith.addf %276, %279 : vector<10x1xf32>
    %281 = math.rsqrt %280 : vector<10x1xf32>
    %282 = vector.broadcast %281 : vector<10x1xf32> to vector<10x32xf32>
    %283 = arith.mulf %278, %282 : vector<10x32xf32>
    %284 = vector.broadcast %264 : vector<1x32xf32> to vector<10x32xf32>
    %285 = arith.mulf %283, %284 : vector<10x32xf32>
    %286 = vector.broadcast %265 : vector<1x32xf32> to vector<10x32xf32>
    %287 = arith.addf %285, %286 : vector<10x32xf32>
    %c40_96 = arith.constant 40 : index
    %c0_97 = arith.constant 0 : index
    %288 = vector.load %arg4[%c40_96, %c0_97] : memref<80x128xf32, #tpu.memory_space<vmem>>, vector<32x128xf32>
    %289 = arith.truncf %287 : vector<10x32xf32> to vector<10x32xbf16>
    %290 = arith.truncf %288 : vector<32x128xf32> to vector<32x128xbf16>
    %cst_98 = arith.constant dense<0.000000e+00> : vector<10x128xf32>
    %291 = tpu.matmul %289, %290, %cst_98 {dimension_numbers = #tpu.dot_dimension_numbers<[1], [0], [0], [1], [0, 0, 1, 1], [], []>} : vector<10x32xbf16>, vector<32x128xbf16>, vector<10x128xf32> -> vector<10x128xf32>
    %c72_99 = arith.constant 72 : index
    %c0_100 = arith.constant 0 : index
    %292 = vector.load %arg4[%c72_99, %c0_100] : memref<80x128xf32, #tpu.memory_space<vmem>>, vector<1x128xf32>
    %293 = vector.broadcast %292 : vector<1x128xf32> to vector<10x128xf32>
    %294 = arith.addf %291, %293 : vector<10x128xf32>
    %cst_101 = arith.constant 5.000000e-01 : f32
    %295 = vector.broadcast %cst_101 : f32 to vector<10x128xf32>
    %296 = arith.mulf %295, %294 : vector<10x128xf32>
    %cst_102 = arith.constant 0.707106769 : f32
    %297 = vector.broadcast %cst_102 : f32 to vector<10x128xf32>
    %298 = arith.mulf %294, %297 : vector<10x128xf32>
    %299 = math.absf %298 : vector<10x128xf32>
    %cst_103 = arith.constant 0.327591091 : f32
    %300 = vector.broadcast %cst_103 : f32 to vector<10x128xf32>
    %301 = arith.mulf %300, %299 : vector<10x128xf32>
    %cst_104 = arith.constant 1.000000e+00 : f32
    %302 = vector.broadcast %cst_104 : f32 to vector<10x128xf32>
    %303 = arith.addf %302, %301 : vector<10x128xf32>
    %cst_105 = arith.constant 1.000000e+00 : f32
    %304 = vector.broadcast %cst_105 : f32 to vector<10x128xf32>
    %305 = arith.divf %304, %303 : vector<10x128xf32>
    %cst_106 = arith.constant 1.06140542 : f32
    %306 = vector.broadcast %cst_106 : f32 to vector<10x128xf32>
    %307 = arith.mulf %306, %305 : vector<10x128xf32>
    %cst_107 = arith.constant -1.45315206 : f32
    %308 = vector.broadcast %cst_107 : f32 to vector<10x128xf32>
    %309 = arith.addf %307, %308 : vector<10x128xf32>
    %310 = arith.mulf %309, %305 : vector<10x128xf32>
    %cst_108 = arith.constant 1.42141378 : f32
    %311 = vector.broadcast %cst_108 : f32 to vector<10x128xf32>
    %312 = arith.addf %310, %311 : vector<10x128xf32>
    %313 = arith.mulf %312, %305 : vector<10x128xf32>
    %cst_109 = arith.constant -0.284496725 : f32
    %314 = vector.broadcast %cst_109 : f32 to vector<10x128xf32>
    %315 = arith.addf %313, %314 : vector<10x128xf32>
    %316 = arith.mulf %315, %305 : vector<10x128xf32>
    %cst_110 = arith.constant 0.254829586 : f32
    %317 = vector.broadcast %cst_110 : f32 to vector<10x128xf32>
    %318 = arith.addf %316, %317 : vector<10x128xf32>
    %319 = arith.mulf %318, %305 : vector<10x128xf32>
    %cst_111 = arith.constant 0.000000e+00 : f32
    %320 = vector.broadcast %cst_111 : f32 to vector<10x128xf32>
    %321 = arith.subf %320, %299 : vector<10x128xf32>
    %322 = arith.mulf %321, %299 : vector<10x128xf32>
    %323 = math.exp %322 : vector<10x128xf32>
    %324 = arith.mulf %319, %323 : vector<10x128xf32>
    %cst_112 = arith.constant 1.000000e+00 : f32
    %325 = vector.broadcast %cst_112 : f32 to vector<10x128xf32>
    %326 = arith.subf %325, %324 : vector<10x128xf32>
    %cst_113 = arith.constant 0.000000e+00 : f32
    %327 = vector.broadcast %cst_113 : f32 to vector<10x128xf32>
    %328 = arith.cmpf olt, %298, %327 : vector<10x128xf32>
    %cst_114 = arith.constant 0.000000e+00 : f32
    %329 = vector.broadcast %cst_114 : f32 to vector<10x128xf32>
    %330 = arith.subf %329, %326 : vector<10x128xf32>
    %331 = arith.select %328, %330, %326 : vector<10x128xi1>, vector<10x128xf32>
    %cst_115 = arith.constant 1.000000e+00 : f32
    %332 = vector.broadcast %cst_115 : f32 to vector<10x128xf32>
    %333 = arith.addf %332, %331 : vector<10x128xf32>
    %334 = arith.mulf %296, %333 : vector<10x128xf32>
    %c576 = arith.constant 576 : index
    %c0_116 = arith.constant 0 : index
    %335 = vector.load %arg2[%c576, %c0_116] : memref<712x32xf32, #tpu.memory_space<vmem>>, vector<128x32xf32>
    %336 = arith.truncf %334 : vector<10x128xf32> to vector<10x128xbf16>
    %337 = arith.truncf %335 : vector<128x32xf32> to vector<128x32xbf16>
    %cst_117 = arith.constant dense<0.000000e+00> : vector<10x32xf32>
    %338 = tpu.matmul %336, %337, %cst_117 {dimension_numbers = #tpu.dot_dimension_numbers<[1], [0], [0], [1], [0, 0, 1, 1], [], []>} : vector<10x128xbf16>, vector<128x32xbf16>, vector<10x32xf32> -> vector<10x32xf32>
    %c704 = arith.constant 704 : index
    %c0_118 = arith.constant 0 : index
    %339 = vector.load %arg2[%c704, %c0_118] : memref<712x32xf32, #tpu.memory_space<vmem>>, vector<1x32xf32>
    %340 = vector.broadcast %339 : vector<1x32xf32> to vector<10x32xf32>
    %341 = arith.addf %338, %340 : vector<10x32xf32>
    %342 = arith.addf %263, %341 : vector<10x32xf32>
    %c200 = arith.constant 200 : index
    %c0_119 = arith.constant 0 : index
    %343 = vector.load %arg2[%c200, %c0_119] : memref<712x32xf32, #tpu.memory_space<vmem>>, vector<1x32xf32>
    %c208 = arith.constant 208 : index
    %c0_120 = arith.constant 0 : index
    %344 = vector.load %arg2[%c208, %c0_120] : memref<712x32xf32, #tpu.memory_space<vmem>>, vector<1x32xf32>
    %cst_121 = arith.constant dense<0.000000e+00> : vector<10xf32>
    %345 = vector.multi_reduction <add>, %342, %cst_121 [1] : vector<10x32xf32> to vector<10xf32>
    %346 = vector.shape_cast %345 : vector<10xf32> to vector<10x1xf32>
    %cst_122 = arith.constant 3.200000e+01 : f32
    %347 = vector.broadcast %cst_122 : f32 to vector<10x1xf32>
    %348 = arith.divf %346, %347 : vector<10x1xf32>
    %349 = vector.broadcast %348 : vector<10x1xf32> to vector<10x32xf32>
    %350 = arith.subf %342, %349 : vector<10x32xf32>
    %351 = arith.mulf %350, %350 : vector<10x32xf32>
    %cst_123 = arith.constant dense<0.000000e+00> : vector<10xf32>
    %352 = vector.multi_reduction <add>, %351, %cst_123 [1] : vector<10x32xf32> to vector<10xf32>
    %353 = vector.shape_cast %352 : vector<10xf32> to vector<10x1xf32>
    %cst_124 = arith.constant 3.200000e+01 : f32
    %354 = vector.broadcast %cst_124 : f32 to vector<10x1xf32>
    %355 = arith.divf %353, %354 : vector<10x1xf32>
    %356 = vector.broadcast %348 : vector<10x1xf32> to vector<10x32xf32>
    %357 = arith.subf %342, %356 : vector<10x32xf32>
    %cst_125 = arith.constant 9.99999997E-7 : f32
    %358 = vector.broadcast %cst_125 : f32 to vector<10x1xf32>
    %359 = arith.addf %355, %358 : vector<10x1xf32>
    %360 = math.rsqrt %359 : vector<10x1xf32>
    %361 = vector.broadcast %360 : vector<10x1xf32> to vector<10x32xf32>
    %362 = arith.mulf %357, %361 : vector<10x32xf32>
    %363 = vector.broadcast %343 : vector<1x32xf32> to vector<10x32xf32>
    %364 = arith.mulf %362, %363 : vector<10x32xf32>
    %365 = vector.broadcast %344 : vector<1x32xf32> to vector<10x32xf32>
    %366 = arith.addf %364, %365 : vector<10x32xf32>
    %c216 = arith.constant 216 : index
    %c0_126 = arith.constant 0 : index
    %367 = vector.load %arg2[%c216, %c0_126] : memref<712x32xf32, #tpu.memory_space<vmem>>, vector<32x32xf32>
    %368 = arith.truncf %366 : vector<10x32xf32> to vector<10x32xbf16>
    %369 = arith.truncf %367 : vector<32x32xf32> to vector<32x32xbf16>
    %cst_127 = arith.constant dense<0.000000e+00> : vector<10x32xf32>
    %370 = tpu.matmul %368, %369, %cst_127 {dimension_numbers = #tpu.dot_dimension_numbers<[1], [0], [0], [1], [0, 0, 1, 1], [], []>} : vector<10x32xbf16>, vector<32x32xbf16>, vector<10x32xf32> -> vector<10x32xf32>
    %c248 = arith.constant 248 : index
    %c0_128 = arith.constant 0 : index
    %371 = vector.load %arg2[%c248, %c0_128] : memref<712x32xf32, #tpu.memory_space<vmem>>, vector<1x32xf32>
    %372 = vector.broadcast %371 : vector<1x32xf32> to vector<10x32xf32>
    %373 = arith.addf %370, %372 : vector<10x32xf32>
    %cst_129 = arith.constant 5.000000e-01 : f32
    %374 = vector.broadcast %cst_129 : f32 to vector<10x32xf32>
    %375 = arith.mulf %374, %373 : vector<10x32xf32>
    %cst_130 = arith.constant 0.707106769 : f32
    %376 = vector.broadcast %cst_130 : f32 to vector<10x32xf32>
    %377 = arith.mulf %373, %376 : vector<10x32xf32>
    %378 = math.absf %377 : vector<10x32xf32>
    %cst_131 = arith.constant 0.327591091 : f32
    %379 = vector.broadcast %cst_131 : f32 to vector<10x32xf32>
    %380 = arith.mulf %379, %378 : vector<10x32xf32>
    %cst_132 = arith.constant 1.000000e+00 : f32
    %381 = vector.broadcast %cst_132 : f32 to vector<10x32xf32>
    %382 = arith.addf %381, %380 : vector<10x32xf32>
    %cst_133 = arith.constant 1.000000e+00 : f32
    %383 = vector.broadcast %cst_133 : f32 to vector<10x32xf32>
    %384 = arith.divf %383, %382 : vector<10x32xf32>
    %cst_134 = arith.constant 1.06140542 : f32
    %385 = vector.broadcast %cst_134 : f32 to vector<10x32xf32>
    %386 = arith.mulf %385, %384 : vector<10x32xf32>
    %cst_135 = arith.constant -1.45315206 : f32
    %387 = vector.broadcast %cst_135 : f32 to vector<10x32xf32>
    %388 = arith.addf %386, %387 : vector<10x32xf32>
    %389 = arith.mulf %388, %384 : vector<10x32xf32>
    %cst_136 = arith.constant 1.42141378 : f32
    %390 = vector.broadcast %cst_136 : f32 to vector<10x32xf32>
    %391 = arith.addf %389, %390 : vector<10x32xf32>
    %392 = arith.mulf %391, %384 : vector<10x32xf32>
    %cst_137 = arith.constant -0.284496725 : f32
    %393 = vector.broadcast %cst_137 : f32 to vector<10x32xf32>
    %394 = arith.addf %392, %393 : vector<10x32xf32>
    %395 = arith.mulf %394, %384 : vector<10x32xf32>
    %cst_138 = arith.constant 0.254829586 : f32
    %396 = vector.broadcast %cst_138 : f32 to vector<10x32xf32>
    %397 = arith.addf %395, %396 : vector<10x32xf32>
    %398 = arith.mulf %397, %384 : vector<10x32xf32>
    %cst_139 = arith.constant 0.000000e+00 : f32
    %399 = vector.broadcast %cst_139 : f32 to vector<10x32xf32>
    %400 = arith.subf %399, %378 : vector<10x32xf32>
    %401 = arith.mulf %400, %378 : vector<10x32xf32>
    %402 = math.exp %401 : vector<10x32xf32>
    %403 = arith.mulf %398, %402 : vector<10x32xf32>
    %cst_140 = arith.constant 1.000000e+00 : f32
    %404 = vector.broadcast %cst_140 : f32 to vector<10x32xf32>
    %405 = arith.subf %404, %403 : vector<10x32xf32>
    %cst_141 = arith.constant 0.000000e+00 : f32
    %406 = vector.broadcast %cst_141 : f32 to vector<10x32xf32>
    %407 = arith.cmpf olt, %377, %406 : vector<10x32xf32>
    %cst_142 = arith.constant 0.000000e+00 : f32
    %408 = vector.broadcast %cst_142 : f32 to vector<10x32xf32>
    %409 = arith.subf %408, %405 : vector<10x32xf32>
    %410 = arith.select %407, %409, %405 : vector<10x32xi1>, vector<10x32xf32>
    %cst_143 = arith.constant 1.000000e+00 : f32
    %411 = vector.broadcast %cst_143 : f32 to vector<10x32xf32>
    %412 = arith.addf %411, %410 : vector<10x32xf32>
    %413 = arith.mulf %375, %412 : vector<10x32xf32>
    %c256 = arith.constant 256 : index
    %c0_144 = arith.constant 0 : index
    %414 = vector.load %arg2[%c256, %c0_144] : memref<712x32xf32, #tpu.memory_space<vmem>>, vector<32x32xf32>
    %415 = arith.truncf %413 : vector<10x32xf32> to vector<10x32xbf16>
    %416 = arith.truncf %414 : vector<32x32xf32> to vector<32x32xbf16>
    %cst_145 = arith.constant dense<0.000000e+00> : vector<10x32xf32>
    %417 = tpu.matmul %415, %416, %cst_145 {dimension_numbers = #tpu.dot_dimension_numbers<[1], [0], [0], [1], [0, 0, 1, 1], [], []>} : vector<10x32xbf16>, vector<32x32xbf16>, vector<10x32xf32> -> vector<10x32xf32>
    %c288 = arith.constant 288 : index
    %c0_146 = arith.constant 0 : index
    %418 = vector.load %arg2[%c288, %c0_146] : memref<712x32xf32, #tpu.memory_space<vmem>>, vector<1x32xf32>
    %419 = vector.broadcast %418 : vector<1x32xf32> to vector<10x32xf32>
    %420 = arith.addf %417, %419 : vector<10x32xf32>
    %c0_147 = arith.constant 0 : index
    %c0_148 = arith.constant 0 : index
    %421 = vector.load %arg5[%c0_147, %c0_148] : memref<10x32xf32, #tpu.memory_space<vmem>>, vector<10x32xf32>
    tpu.vector_store %arg5[%c0_147, %c0_148], %366 {strides = array<i32>} : memref<10x32xf32, #tpu.memory_space<vmem>>, vector<10x32xf32>,
    %c0_149 = arith.constant 0 : index
    %c0_150 = arith.constant 0 : index
    %422 = vector.load %arg6[%c0_149, %c0_150] : memref<10x32xf32, #tpu.memory_space<vmem>>, vector<10x32xf32>
    tpu.vector_store %arg6[%c0_149, %c0_150], %420 {strides = array<i32>} : memref<10x32xf32, #tpu.memory_space<vmem>>, vector<10x32xf32>,
    return
  }
}

</mosaic_0001>

<bundles_post_ra>
// kernel: student_vit_forward.1
= control target key start
LH: loop header
LB: loop body
LE: loop exit
PB: predicated region body
PF: predicated region fallthrough
CT: control target
= control target key end

     0   :  { %v2041_v0 = vmov 0   ;;  %vm73_vm0 = vcmask 523264   ;;  %vm53_vm1 = vcmask 1044480   ;;  %vm120_vm2 = vcmask 261120   ;;  %s2044_s20 = smov 96   ;;  %s2045_s21 = smov 80   ;;  %s2684_s2 = inlined_call_operand.vmem [shape: f32[712,32], index: 2, kind: input, shape index: {}]   ;;  %s2685_s0 = inlined_call_operand.vmem [shape: f32[10,192], index: 0, kind: input, shape index: {}]   ;;  %s2686_s3 = inlined_call_operand.vmem [shape: f32[80,96], index: 3, kind: input, shape index: {}]   ;;  %s2687_s1 = inlined_call_operand.vmem [shape: f32[10,10], index: 1, kind: input, shape index: {}]   ;;  %s2688_s4 = inlined_call_operand.vmem [shape: f32[80,128], index: 4, kind: input, shape index: {}]   ;;  %s2689_s5 = inlined_call_operand.vmem [shape: f32[10,32], index: 5, kind: output, shape index: {0}]   ;;  %s2690_s6 = inlined_call_operand.vmem [shape: f32[10,32], index: 6, kind: output, shape index: {1}]  }
   0x1   :  { %77 = vmatprep.subr.bf16.mxu0 %v2041_v0  ;;  %v25_v1 = vld [vmem:[%s2684_s2] sm:$0xff]  ;;  %v26_v2 = vld [vmem:[%s2684_s2 + $0x8] sm:$0xff]  ;;  %v27_v3 = vld [vmem:[%s2684_s2 + $0x10] sm:$0xff]  ;;  %vm124_vm3 = vcmask 254976   ;;  %vm2043_vm4 = vmmov 0   ;;  %s2046_s22 = smov 112  }
   0x2   :  { %v61_v4 = vpack.c.bf16 %v26_v2, %v25_v1  ;;  %v28_v5 = vld [vmem:[%s2684_s2 + $0x18] sm:$0xff]  ;;  %v29_v7 = vld [vmem:[%s2684_s2 + $0x20] sm:$0xff]  ;;  %v30_v8 = vld [vmem:[%s2684_s2 + $0x28] sm:$0xff]  ;;  %vm221_vm5 = vcmask 130048   ;;  %vm273_vm6 = vcmask 80896   ;;  %vm277_vm7 = vcmask 74752  }
   0x3   :  { %v62_v6 = vpack.c.bf16 %v28_v5, %v27_v3  ;;  %v63_v9 = vpack.c.bf16 %v30_v8, %v29_v7  ;;  %v31_v10 = vld [vmem:[%s2684_s2 + $0x30] sm:$0xff]  ;;  %v32_v11 = vld [vmem:[%s2684_s2 + $0x38] sm:$0xff]  ;;  %v56_v12 = vld [vmem:[%s2685_s0 + $0x8] sm:$0xff]  ;;  %v2042_v3 = vmov 0.0   ;;  %s2048_s27 = smov 48  }
   0x4   :  { %78 = vmatpush1.bf16.msra.mxu0 %v61_v4  ;;  %v58_v13 = vld [vmem:[%s2685_s0 + $0x18] sm:$0x3]  ;;  %v64_v15 = vpack.c.bf16 %v32_v11, %v31_v10  ;;  %v33_v16 = vld [vmem:[%s2684_s2 + $0x40] sm:$0xff]  ;;  %v34_v17 = vld [vmem:[%s2684_s2 + $0x48] sm:$0xff]  ;;  %1797 = vmatprep.subr.bf16.mxu1 %v2042_v3 }
   0x5   :  { %79 = vmatprep.subr.bf16.mxu0 %v2041_v0  ;;  %v60_v14 = vpack.c.bf16 %v58_v13, %v56_v12  ;;  %v65_v18 = vpack.c.bf16 %v34_v17, %v33_v16  ;;  %v35_v19 = vld [vmem:[%s2684_s2 + $0x50] sm:$0xff]  ;;  %v36_v20 = vld [vmem:[%s2684_s2 + $0x58] sm:$0xff]  ;;  %v37_v22 = vld [vmem:[%s2684_s2 + $0x60] sm:$0xff]  ;;  %1801 = vmatprep.mubr.msk.bf16.mxu1 %vm2043_vm4, %v2042_v3 }
   0x6   :  { %v66_v21 = vpack.c.bf16 %v36_v20, %v35_v19  ;;  %v38_v23 = vld [vmem:[%s2684_s2 + $0x68] sm:$0xff]  ;;  %v39_v25 = vld [vmem:[%s2684_s2 + $0x70] sm:$0xff]  ;;  %v40_v26 = vld [vmem:[%s2684_s2 + $0x78] sm:$0xff] }
   0x7   :  { %1698 = vmatprep.mubr.msk.bf16.mxu0 %vm73_vm0, %v60_v14  ;;  %v67_v24 = vpack.c.bf16 %v38_v23, %v37_v22  ;;  %v68_v27 = vpack.c.bf16 %v40_v26, %v39_v25  ;;  %v41_v28 = vld [vmem:[%s2684_s2 + $0x80] sm:$0xff]  ;;  %v42_v29 = vld [vmem:[%s2684_s2 + $0x88] sm:$0xff]  ;;  %v43_v31 = vld [vmem:[%s2684_s2 + $0x90] sm:$0xff] }
   0x8   :  { %80 = vmatpush1.bf16.msra.mxu0 %v62_v6  ;;  %v69_v30 = vpack.c.bf16 %v42_v29, %v41_v28  ;;  %v44_v32 = vld [vmem:[%s2684_s2 + $0x98] sm:$0xff]  ;;  %v45_v34 = vld [vmem:[%s2684_s2 + $0xa0] sm:$0xff]  ;;  %v46_v35 = vld [vmem:[%s2684_s2 + $0xa8] sm:$0xff] }
   0x9   :  { %81 = vmatprep.subr.bf16.mxu0 %v2041_v0  ;;  %v70_v33 = vpack.c.bf16 %v44_v32, %v43_v31  ;;  %v71_v36 = vpack.c.bf16 %v46_v35, %v45_v34  ;;  %v47_v37 = vld [vmem:[%s2684_s2 + $0xb0] sm:$0xff]  ;;  %v48_v38 = vld [vmem:[%s2684_s2 + $0xb8] sm:$0xff]  ;;  %v55_v40 = vld [vmem:[%s2685_s0] sm:$0xff] }
   0xa   :  { %v72_v39 = vpack.c.bf16 %v48_v38, %v47_v37  ;;  %v57_v41 = vld [vmem:[%s2685_s0 + $0x10] sm:$0x3]  ;;  %v49_v43 = vld [vmem:[%s2684_s2 + $0xc0] sm:$0x1f]  ;;  %v162_v1 = vld [vmem:[%s2686_s3 + $0x8] sm:$0xff] }
   0xb   :  { %v59_v42 = vpack.c.bf16 %v57_v41, %v55_v40  ;;  %v51_v44 = vrot.slane %v49_v43, 3  ;;  %v163_v4 = vld [vmem:[%s2686_s3 + $0x10] sm:$0xff]  ;;  %v164_v5 = vld [vmem:[%s2686_s3 + $0x18] sm:$0xff]  ;;  %v2245_v35 = vld [vmem:[%s2687_s1] sm:$0xff] }
   0xc   :  { %82 = vmatpush1.bf16.msra.mxu0 %v63_v9  ;;  %v167_v6 = vpack.c.bf16 %v164_v5, %v163_v4  ;;  %v1700_v19 = vld [vmem:[%s2684_s2 + $0x130] ss:$0 sm:$0xff] }
   0xd   :  { %83 = vmatprep.subr.bf16.mxu0 %v2041_v0  ;;  %v54_v45 = vsel %vm53_vm1, %v49_v43, %v51_v44 }
  0x10   :  { %84 = vmatpush1.bf16.msra.mxu0 %v64_v15  ;;  %v1699_v15 = vld [vmem:[%s2684_s2 + $0x128] ss:$0 sm:$0xff] }
  0x11   :  { %85 = vmatprep.subr.bf16.mxu0 %v2041_v0 }
  0x14   :  { %86 = vmatpush1.bf16.msra.mxu0 %v65_v18 }
  0x15   :  { %87 = vmatprep.subr.bf16.mxu0 %v2041_v0 }
  0x18   :  { %88 = vmatpush1.bf16.msra.mxu0 %v66_v21 }
  0x19   :  { %89 = vmatprep.subr.bf16.mxu0 %v2041_v0 }
  0x1c   :  { %90 = vmatpush1.bf16.msra.mxu0 %v67_v24  ;;  %v1701_v24 = vld [vmem:[%s2686_s3 + $0x20] ss:$0 sm:$0xff] }
  0x1d   :  { %91 = vmatprep.subr.bf16.mxu0 %v2041_v0 }
  0x20   :  { %92 = vmatpush1.bf16.msra.mxu0 %v68_v27 }
  0x21   :  { %93 = vmatprep.subr.bf16.mxu0 %v2041_v0 }
  0x24   :  { %94 = vmatpush1.bf16.msra.mxu0 %v69_v30 }
  0x25   :  { %95 = vmatprep.subr.bf16.mxu0 %v2041_v0 }
  0x28   :  { %96 = vmatpush1.bf16.msra.mxu0 %v70_v33 }
  0x29   :  { %97 = vmatprep.subr.bf16.mxu0 %v2041_v0 }
  0x2c   :  { %98 = vmatpush1.bf16.msra.mxu0 %v71_v36 }
  0x2d   :  { %99 = vmatprep.subr.bf16.mxu0 %v2041_v0  ;;  %v161_v0 = vld [vmem:[%s2686_s3] sm:$0xff] }
  0x2e   :  { %v166_v2 = vpack.c.bf16 %v162_v1, %v161_v0 }
  0x30   :  { %100 = vmatpush1.bf16.msra.mxu0 %v72_v39  ;;  %1798 = vmatpush3.bf16.msra.mxu1 %v166_v2  ;;  %v2250_v39 = vld [vmem:[%s2687_s1 + $0x8] sm:$0x3]  ;;  %s2047_s1 = smov 64  }
  0x31   :  { %1849 = vmatprep.subr.bf16.mxu0 %v2042_v3  ;;  %1799 = vmatprep.subr.bf16.mxu1 %v2042_v3 }
  0x33   :  { %110 = vmatmul.mubr.bf16.vlgmr.msra.gmra.mrb[0].mxu0 %v59_v42 }
  0x34   :  { %1865 = vmatprep.mubr.msk.bf16.mxu0 %vm2043_vm4, %v2042_v3  ;;  %1800 = vmatpush3.bf16.msra.mxu1 %v167_v6 }
  0x35   :  { %1805 = vmatprep.subr.bf16.mxu1 %v2042_v3 }
 0x106   :  { %v111_v46 = vpop.f32.mrb[0].mxu0 }
 0x107   :  { %v2184_v47 = vadd.f32 %v111_v46, %v54_v45  ;;  %v113_v48 = vpop.f32.mrb[1].mxu0 }
 0x108   :  { %v114_v49 = vpop.f32.mrb[2].mxu0 }
 0x109   :  { %v2186_v50 = vadd.f32 %v114_v49, %v51_v44  ;;  %v116_v51 = vpop.f32.mrb[3].mxu0  ;;  %v121_v52 = vsel %vm120_vm2, %v2184_v47, 0.0 }
 0x10a   :  { %122 = vadd.xlane.f32.xlu0 %v121_v52 }
 0x10b   :  { %v125_v53 = vsel %vm124_vm3, %v2186_v50, 0.0 }
 0x10e   :  { %126 = vadd.xlane.f32.xlu0 %v125_v53 }
 0x197   :  { %v123_v54 = vpop.xlane.xlu0 %122 }
 0x198   :  { %v129_v55 = vmul.f32 0.03125, %v123_v54 }
 0x19a   :  { %v131_v56 = vsub.f32 %v2184_v47, %v129_v55 }
 0x19b   :  { %v127_v57 = vpop.xlane.xlu0 %126 }
 0x19c   :  { %v130_v58 = vmul.f32 0.03125, %v127_v57  ;;  %v133_v59 = vmul.f32 %v131_v56, %v131_v56 }
 0x19e   :  { %v132_v60 = vsub.f32 %v2186_v50, %v130_v58  ;;  %v135_v61 = vsel %vm120_vm2, %v133_v59, 0.0 }
 0x19f   :  { %136 = vadd.xlane.f32.xlu1 %v135_v61 }
 0x1a0   :  { %v134_v62 = vmul.f32 %v132_v60, %v132_v60 }
 0x1a2   :  { %v138_v63 = vsel %vm124_vm3, %v134_v62, 0.0 }
 0x1a3   :  { %139 = vadd.xlane.f32.xlu1 %v138_v63 }
 0x22c   :  { %v137_v7 = vpop.xlane.xlu1 %136 }
 0x22d   :  { %v141_v8 = vmul.f32 0.03125, %v137_v7 }
 0x22f   :  { %v143_v9 = vadd.f32 1e-06, %v141_v8 }
 0x230   :  { %v140_v10 = vpop.xlane.xlu1 %139 }
 0x231   :  { %1965 = vrsqrt.f32 %v143_v9  ;;  %v142_v11 = vmul.f32 0.03125, %v140_v10 }
 0x233   :  { %v144_v12 = vadd.f32 1e-06, %v142_v11 }
 0x235   :  { %1967 = vrsqrt.f32 %v144_v12 }
 0x23b   :  { %v1966_v13 = vpop.eup %1965 }
 0x23c   :  { %v147_v14 = vmul.f32 %v1966_v13, %v131_v56 }
 0x23e   :  { %v153_v18 = vmul.f32 %v1699_v15, %v147_v14 }
 0x23f   :  { %v1968_v16 = vpop.eup %1967 }
 0x240   :  { %v148_v17 = vmul.f32 %v1968_v16, %v132_v60  ;;  %v159_v21 = vadd.f32 %v1700_v19, %v153_v18 }
 0x242   :  { %v154_v20 = vmul.f32 %v1699_v15, %v148_v17 }
 0x244   :  { %v160_v22 = vadd.f32 %v1700_v19, %v154_v20 }
 0x246   :  { %v165_v23 = vpack.c.bf16 %v160_v22, %v159_v21 }
 0x248   :  { %1802 = vmatmul.mubr.msk.bf16.vlgmr.msra.gmra.mrb[0].mxu1 %vm120_vm2, %v165_v23 }
 0x249   :  { %1807 = vmatprep.mubr.msk.bf16.mxu1 %vm2043_vm4, %v2042_v3 }
 0x31b   :  { %v210_v25 = vpop.f32.mrb[0].mxu1 }
 0x31c   :  { %v1803_v26 = vpop.f32.mrb[1].mxu1  ;;  %v211_v28 = vadd.f32 %v1701_v24, %v210_v25 }
 0x31d   :  { %v213_v27 = vpop.f32.mrb[2].mxu1 }
 0x31e   :  { %v214_v29 = vadd.f32 %v1701_v24, %v213_v27  ;;  %v1804_v30 = vpop.f32.mrb[3].mxu1 }
 0x320   :  { %v2228_v31 = vpack.c.bf16 %v214_v29, %v211_v28 }
 0x322   :  { %219 = vrot.lane.b32.xlu0 %v2228_v31, %s2044_s20 }
 0x326   :  { %353 = vrot.lane.b32.xlu0 %v2228_v31, %s2045_s21 }
 0x32a   :  { %351 = vrot.lane.b32.xlu0 %v2228_v31, %s2046_s22 }
 0x394   :  { %v220_v32 = vpop.permute.xlu0 %219 }
 0x395   :  { %v226_v33 = vsel %vm221_vm5, %v220_v32, 0 }
 0x396   :  { %1806 = vmatpush3.bf16.xpose.msra.mxu1 %v226_v33 }
 0x397   :  { %1811 = vmatprep.subr.bf16.mxu1 %v2042_v3 }
 0x398   :  { %v354_v2 = vpop.permute.xlu0 %353 }
 0x399   :  { %v359_v5 = vsel %vm221_vm5, %v354_v2, 0 }
 0x39c   :  { %v352_v6 = vpop.permute.xlu0 %351 }
 0x39d   :  { %1808 = vmatmul.mubr.msk.bf16.vlgmr.msra.gmra.mrb[4].mxu1 %vm221_vm5, %v2228_v31 }
 0x39e   :  { %1813 = vmatprep.mubr.msk.bf16.mxu1 %vm2043_vm4, %v2042_v3 }
 0x470   :  { %v262_v34 = vpop.f32.mrb[4].mxu1 }
 0x471   :  { %v269_v36 = vmul.f32 0.25, %v262_v34  ;;  %v1809_v37 = vpop.f32.mrb[5].mxu1 }
 0x472   :  { %v265_v38 = vpop.f32.mrb[6].mxu1 }
 0x473   :  { %v270_v40 = vmul.f32 0.25, %v265_v38  ;;  %v1810_v41 = vpop.f32.mrb[7].mxu1  ;;  %v271_v42 = vadd.f32 %v269_v36, %v2245_v35 }
 0x474   :  { %v479_v41 = vld [vmem:[%s2684_s2 + $0x150] sm:$0xff] }
 0x475   :  { %v274_v43 = vsel %vm273_vm6, %v271_v42, -inf  ;;  %v272_v44 = vadd.f32 %v270_v40, %v2250_v39  ;;  %v478_v40 = vld [vmem:[%s2684_s2 + $0x148] sm:$0xff] }
 0x476   :  { %275 = vmax.xlane.f32.xlu1 %v274_v43 }
 0x477   :  { %v278_v45 = vsel %vm277_vm7, %v272_v44, -inf }
 0x47a   :  { %279 = vmax.xlane.f32.xlu1 %v278_v45 }
 0x503   :  { %v276_v46 = vpop.xlane.xlu1 %275 }
 0x504   :  { %v281_v48 = vsub.f32 %v271_v42, %v276_v46  ;;  %v347_v46 = vld [vmem:[%s2684_s2 + $0x138] sm:$0xff] }
 0x506   :  { %v283_v49 = vmul.f32 1.442695, %v281_v48  ;;  %v348_v48 = vld [vmem:[%s2684_s2 + $0x140] sm:$0xff] }
 0x507   :  { %v280_v51 = vpop.xlane.xlu1 %279 }
 0x508   :  { %1969 = vpow2.f32 %v283_v49  ;;  %v282_v52 = vsub.f32 %v272_v44, %v280_v51  ;;  %v481_v44 = vpack.c.bf16 %v479_v41, %v478_v40 }
 0x50a   :  { %v285_v53 = vmul.f32 1.442695, %v282_v52 }
 0x50c   :  { %1971 = vpow2.f32 %v285_v53  ;;  %v350_v53 = vpack.c.bf16 %v348_v48, %v347_v46  ;;  %v731_v46 = vld [vmem:[%s2684_s2 + $0x180] sm:$0xff]  ;;  %v732_v48 = vld [vmem:[%s2684_s2 + $0x188] sm:$0xff] }
 0x512   :  { %v1970_v54 = vpop.eup %1969 }
 0x513   :  { %v287_v55 = vsel %vm273_vm6, %v1970_v54, 0.0 }
 0x514   :  { %288 = vadd.xlane.f32.xlu1 %v287_v55 }
 0x516   :  { %v1972_v56 = vpop.eup %1971 }
 0x517   :  { %v290_v57 = vsel %vm277_vm7, %v1972_v56, 0.0 }
 0x518   :  { %291 = vadd.xlane.f32.xlu1 %v290_v57 }
 0x529   :  { %298 = vrot.lane.b32.xlu1 %v2228_v31, %s2047_s1 }
 0x5a1   :  { %v289_v58 = vpop.xlane.xlu1 %288 }
 0x5a2   :  { %1973 = vrcp.f32 %v289_v58 }
 0x5a5   :  { %v292_v59 = vpop.xlane.xlu1 %291 }
 0x5a6   :  { %1975 = vrcp.f32 %v292_v59 }
 0x5a9   :  { %v299_v60 = vpop.permute.xlu1 %298 }
 0x5aa   :  { %v304_v61 = vsel %vm53_vm1, %v299_v60, 0 }
 0x5ab   :  { %1812 = vmatpush3.bf16.msra.mxu1 %v304_v61 }
 0x5ac   :  { %1817 = vmatprep.subr.bf16.mxu1 %v2042_v3  ;;  %v1974_v62 = vpop.eup %1973 }
 0x5ad   :  { %v294_v0 = vmul.f32 %v1974_v62, %v1970_v54 }
 0x5b0   :  { %v1976_v63 = vpop.eup %1975 }
 0x5b1   :  { %v296_v1 = vmul.f32 %v1976_v63, %v1972_v56  ;;  %v1709_v63 = vld [vmem:[%s2684_s2 + $0x158] ss:$0 sm:$0xff] }
 0x5b3   :  { %v297_v4 = vpack.c.bf16 %v296_v1, %v294_v0 }
 0x5b5   :  { %1814 = vmatmul.mubr.msk.bf16.vlgmr.msra.gmra.mrb[8].mxu1 %vm273_vm6, %v297_v4 }
 0x5b6   :  { %1818 = vmatpush3.bf16.xpose.msra.mxu1 %v359_v5  ;;  %1819 = vmatprep.mubr.msk.bf16.mxu1 %vm2043_vm4, %v2042_v3 }
 0x5b7   :  { %1823 = vmatprep.subr.bf16.mxu1 %v2042_v3 }
 0x5bd   :  { %1820 = vmatmul.mubr.msk.bf16.vlgmr.msra.gmra.mrb[12].mxu1 %vm221_vm5, %v352_v6 }
 0x5be   :  { %1825 = vmatprep.mubr.msk.bf16.mxu1 %vm2043_vm4, %v2042_v3 }
 0x688   :  { %v2270_v7 = vpop.f32.mrb[8].mxu1 }
 0x689   :  { %v1815_v8 = vpop.f32.mrb[9].mxu1 }
 0x68a   :  { %v2272_v9 = vpop.f32.mrb[10].mxu1 }
 0x68b   :  { %v349_v10 = vpack.c.bf16 %v2272_v9, %v2270_v7  ;;  %v1816_v11 = vpop.f32.mrb[11].mxu1 }
 0x690   :  { %v395_v12 = vpop.f32.mrb[12].mxu1 }
 0x691   :  { %v402_v13 = vmul.f32 0.25, %v395_v12  ;;  %v1821_v14 = vpop.f32.mrb[13].mxu1 }
 0x692   :  { %v398_v15 = vpop.f32.mrb[14].mxu1 }
 0x693   :  { %v403_v16 = vmul.f32 0.25, %v398_v15  ;;  %v1822_v17 = vpop.f32.mrb[15].mxu1  ;;  %v404_v18 = vadd.f32 %v402_v13, %v2245_v35 }
 0x695   :  { %v406_v19 = vsel %vm273_vm6, %v404_v18, -inf  ;;  %v405_v20 = vadd.f32 %v403_v16, %v2250_v39 }
 0x696   :  { %407 = vmax.xlane.f32.xlu0 %v406_v19  ;;  %v620_v19 = vld [vmem:[%s2688_s4 + $0x8] sm:$0xff] }
 0x697   :  { %v409_v21 = vsel %vm277_vm7, %v405_v20, -inf }
 0x698   :  { %410 = vmax.xlane.f32.xlu1 %v409_v21  ;;  %v621_v21 = vld [vmem:[%s2688_s4 + $0x10] sm:$0xff] }
 0x723   :  { %v408_v22 = vpop.xlane.xlu0 %407 }
 0x724   :  { %v412_v23 = vsub.f32 %v404_v18, %v408_v22  ;;  %v619_v18 = vld [vmem:[%s2688_s4] sm:$0xff]  ;;  %v622_v22 = vld [vmem:[%s2688_s4 + $0x18] sm:$0xff] }
 0x725   :  { %v411_v24 = vpop.xlane.xlu1 %410 }
 0x726   :  { %v414_v25 = vmul.f32 1.442695, %v412_v23  ;;  %v413_v26 = vsub.f32 %v405_v20, %v411_v24  ;;  %v624_v20 = vpack.c.bf16 %v620_v19, %v619_v18  ;;  %v625_v23 = vpack.c.bf16 %v622_v22, %v621_v21 }
 0x728   :  { %1977 = vpow2.f32 %v414_v25  ;;  %v416_v27 = vmul.f32 1.442695, %v413_v26 }
 0x72a   :  { %1979 = vpow2.f32 %v416_v27 }
 0x732   :  { %v1978_v28 = vpop.eup %1977 }
 0x733   :  { %v418_v29 = vsel %vm273_vm6, %v1978_v28, 0.0 }
 0x734   :  { %v1980_v30 = vpop.eup %1979  ;;  %419 = vadd.xlane.f32.xlu0 %v418_v29 }
 0x735   :  { %v421_v32 = vsel %vm277_vm7, %v1980_v30, 0.0 }
 0x738   :  { %422 = vadd.xlane.f32.xlu0 %v421_v32 }
 0x74e   :  { %429 = vrot.lane.b32.xlu0 %v2228_v31, %s2048_s27 }
 0x7c1   :  { %v420_v33 = vpop.xlane.xlu0 %419 }
 0x7c2   :  { %1981 = vrcp.f32 %v420_v33  ;;  %v1710_v33 = vld [vmem:[%s2684_s2 + $0x160] ss:$0 sm:$0xff] }
 0x7c5   :  { %v423_v34 = vpop.xlane.xlu0 %422 }
 0x7c6   :  { %1983 = vrcp.f32 %v423_v34 }
 0x7c9   :  { %v430_v36 = vpop.permute.xlu0 %429 }
 0x7ca   :  { %v435_v37 = vsel %vm53_vm1, %v430_v36, 0 }
 0x7cb   :  { %1824 = vmatpush3.bf16.msra.mxu1 %v435_v37 }
 0x7cc   :  { %1829 = vmatprep.subr.bf16.mxu1 %v2042_v3  ;;  %v1982_v38 = vpop.eup %1981 }
 0x7cd   :  { %v425_v42 = vmul.f32 %v1982_v38, %v1978_v28  ;;  %v1711_v38 = vld [vmem:[%s2684_s2 + $0x168] ss:$0 sm:$0xff] }
 0x7d0   :  { %v1984_v31 = vpop.eup %1983 }
 0x7d1   :  { %v427_v43 = vmul.f32 %v1984_v31, %v1980_v30 }
 0x7d3   :  { %v428_v45 = vpack.c.bf16 %v427_v43, %v425_v42  ;;  %v729_v43 = vld [vmem:[%s2684_s2 + $0x170] sm:$0xff] }
 0x7d5   :  { %1826 = vmatmul.mubr.msk.bf16.vlgmr.msra.gmra.mrb[16].mxu1 %vm273_vm6, %v428_v45 }
 0x7d6   :  { %1830 = vmatpush3.bf16.msra.mxu1 %v481_v44  ;;  %1831 = vmatprep.mubr.msk.bf16.mxu1 %vm2043_vm4, %v2042_v3  ;;  %v730_v44 = vld [vmem:[%s2684_s2 + $0x178] sm:$0xff] }
 0x7d7   :  { %1835 = vmatprep.subr.bf16.mxu1 %v2042_v3  ;;  %v746_v45 = vpack.c.bf16 %v730_v44, %v729_v43 }
 0x7d9   :  { %1850 = vmatpush3.bf16.msra.mxu0 %v746_v45 }
 0x7da   :  { %1851 = vmatprep.subr.bf16.mxu0 %v2042_v3 }
 0x8a8   :  { %v471_v49 = vpop.f32.mrb[16].mxu1 }
 0x8a9   :  { %v1827_v51 = vpop.f32.mrb[17].mxu1 }
 0x8aa   :  { %v474_v52 = vpop.f32.mrb[18].mxu1  ;;  %v733_v51 = vld [vmem:[%s2684_s2 + $0x190] sm:$0xff] }
 0x8ab   :  { %v480_v54 = vpack.c.bf16 %v474_v52, %v471_v49  ;;  %v1828_v55 = vpop.f32.mrb[19].mxu1  ;;  %v747_v49 = vpack.c.bf16 %v732_v48, %v731_v46  ;;  %v734_v52 = vld [vmem:[%s2684_s2 + $0x198] sm:$0xff] }
 0x8ac   :  { %v736_v55 = vld [vmem:[%s2684_s2 + $0x1a8] sm:$0xff] }
 0x8ad   :  { %1832 = vmatmul.mubr.msk.bf16.vlgmr.msra.gmra.mrb[20].mxu1 %vm221_vm5, %v480_v54  ;;  %1852 = vmatpush3.bf16.msra.mxu0 %v747_v49  ;;  %v735_v54 = vld [vmem:[%s2684_s2 + $0x1a0] sm:$0xff] }
 0x8ae   :  { %1836 = vmatpush3.bf16.msra.mxu1 %v350_v53  ;;  %1837 = vmatprep.mubr.msk.bf16.mxu1 %vm2043_vm4, %v2042_v3  ;;  %v748_v53 = vpack.c.bf16 %v734_v52, %v733_v51 }
 0x8af   :  { %1841 = vmatprep.subr.bf16.mxu1 %v2042_v3  ;;  %1853 = vmatprep.subr.bf16.mxu0 %v2042_v3 }
 0x8b1   :  { %1854 = vmatpush3.bf16.msra.mxu0 %v748_v53 }
 0x8b2   :  { %1855 = vmatprep.subr.bf16.mxu0 %v2042_v3 }
 0x8b5   :  { %1838 = vmatmul.mubr.msk.bf16.vlgmr.msra.gmra.mrb[24].mxu1 %vm221_vm5, %v349_v10 }
 0x8b6   :  { %1845 = vmatprep.mubr.msk.bf16.mxu1 %vm2043_vm4, %v2042_v3  ;;  %1842 = vmatpush3.bf16.msra.mxu1 %v624_v20 }
 0x8b7   :  { %1843 = vmatprep.subr.bf16.mxu1 %v2042_v3 }
 0x8ba   :  { %1844 = vmatpush3.bf16.msra.mxu1 %v625_v23 }
 0x8bb   :  { %1869 = vmatprep.subr.bf16.mxu1 %v2042_v3 }
 0x980   :  { %v519_v56 = vpop.f32.mrb[20].mxu1 }
 0x981   :  { %v1833_v57 = vpop.f32.mrb[21].mxu1 }
 0x982   :  { %v522_v58 = vpop.f32.mrb[22].mxu1  ;;  %v737_v57 = vld [vmem:[%s2684_s2 + $0x1b0] sm:$0xff] }
 0x983   :  { %v1834_v59 = vpop.f32.mrb[23].mxu1 }
 0x988   :  { %v563_v60 = vpop.f32.mrb[24].mxu1 }
 0x989   :  { %v564_v61 = vadd.f32 %v563_v60, %v519_v56  ;;  %v1839_v62 = vpop.f32.mrb[25].mxu1  ;;  %v749_v56 = vpack.c.bf16 %v736_v55, %v735_v54  ;;  %v739_v60 = vld [vmem:[%s2684_s2 + $0x1c0] sm:$0xff] }
 0x98a   :  { %v566_v0 = vpop.f32.mrb[26].mxu1 }
 0x98b   :  { %v570_v1 = vadd.f32 %v564_v61, %v2184_v47  ;;  %v567_v2 = vadd.f32 %v566_v0, %v522_v58  ;;  %v1840_v4 = vpop.f32.mrb[27].mxu1  ;;  %1856 = vmatpush3.bf16.msra.mxu0 %v749_v56  ;;  %v738_v58 = vld [vmem:[%s2684_s2 + $0x1b8] sm:$0xff]  ;;  %v740_v61 = vld [vmem:[%s2684_s2 + $0x1c8] sm:$0xff] }
 0x98c   :  { %1857 = vmatprep.subr.bf16.mxu0 %v2042_v3  ;;  %v750_v59 = vpack.c.bf16 %v738_v58, %v737_v57  ;;  %v751_v62 = vpack.c.bf16 %v740_v61, %v739_v60  ;;  %v742_v0 = vld [vmem:[%s2684_s2 + $0x1d8] sm:$0xff]  ;;  %v744_v4 = vld [vmem:[%s2684_s2 + $0x1e8] sm:$0xff] }
 0x98d   :  { %v2313_v5 = vadd.f32 %v1709_v63, %v570_v1  ;;  %v571_v6 = vadd.f32 %v567_v2, %v2186_v50  ;;  %v743_v2 = vld [vmem:[%s2684_s2 + $0x1e0] sm:$0xff] }
 0x98f   :  { %v2316_v7 = vadd.f32 %v1709_v63, %v571_v6  ;;  %v581_v8 = vsel %vm120_vm2, %v2313_v5, 0.0  ;;  %1858 = vmatpush3.bf16.msra.mxu0 %v750_v59  ;;  %v741_v63 = vld [vmem:[%s2684_s2 + $0x1d0] sm:$0xff]  ;;  %v753_v6 = vpack.c.bf16 %v744_v4, %v743_v2 }
 0x990   :  { %582 = vadd.xlane.f32.xlu1 %v581_v8  ;;  %1859 = vmatprep.subr.bf16.mxu0 %v2042_v3  ;;  %v752_v1 = vpack.c.bf16 %v742_v0, %v741_v63  ;;  %v1712_v8 = vld [vmem:[%s2688_s4 + $0x20] ss:$0 sm:$0xff] }
 0x991   :  { %v584_v9 = vsel %vm124_vm3, %v2316_v7, 0.0 }
 0x993   :  { %1860 = vmatpush3.bf16.msra.mxu0 %v751_v62 }
 0x994   :  { %585 = vadd.xlane.f32.xlu1 %v584_v9  ;;  %1861 = vmatprep.subr.bf16.mxu0 %v2042_v3 }
 0x997   :  { %1862 = vmatpush3.bf16.msra.mxu0 %v752_v1 }
 0x998   :  { %1863 = vmatprep.subr.bf16.mxu0 %v2042_v3 }
 0x99b   :  { %1864 = vmatpush3.bf16.msra.mxu0 %v753_v6  ;;  %v1714_v6 = vld [vmem:[%s2684_s2 + $0x1f0] ss:$0 sm:$0xff] }
 0x99c   :  { %1895 = vmatprep.subr.bf16.mxu0 %v2042_v3 }
 0xa1d   :  { %v583_v10 = vpop.xlane.xlu1 %582 }
 0xa1e   :  { %v587_v11 = vmul.f32 0.03125, %v583_v10 }
 0xa20   :  { %v589_v47 = vsub.f32 %v2313_v5, %v587_v11 }
 0xa21   :  { %v586_v12 = vpop.xlane.xlu1 %585 }
 0xa22   :  { %v588_v13 = vmul.f32 0.03125, %v586_v12  ;;  %v591_v14 = vmul.f32 %v589_v47, %v589_v47 }
 0xa24   :  { %v590_v15 = vsub.f32 %v2316_v7, %v588_v13  ;;  %v593_v50 = vsel %vm120_vm2, %v591_v14, 0.0 }
 0xa25   :  { %594 = vadd.xlane.f32.xlu1 %v593_v50 }
 0xa26   :  { %v592_v16 = vmul.f32 %v590_v15, %v590_v15 }
 0xa28   :  { %v596_v17 = vsel %vm124_vm3, %v592_v16, 0.0 }
 0xa29   :  { %597 = vadd.xlane.f32.xlu1 %v596_v17 }
 0xab2   :  { %v595_v24 = vpop.xlane.xlu1 %594 }
 0xab3   :  { %v599_v25 = vmul.f32 0.03125, %v595_v24 }
 0xab5   :  { %v601_v26 = vadd.f32 1e-06, %v599_v25 }
 0xab6   :  { %v598_v27 = vpop.xlane.xlu1 %597 }
 0xab7   :  { %1985 = vrsqrt.f32 %v601_v26  ;;  %v600_v28 = vmul.f32 0.03125, %v598_v27 }
 0xab9   :  { %v602_v29 = vadd.f32 1e-06, %v600_v28 }
 0xabb   :  { %1987 = vrsqrt.f32 %v602_v29 }
 0xac1   :  { %v1986_v30 = vpop.eup %1985 }
 0xac2   :  { %v605_v32 = vmul.f32 %v1986_v30, %v589_v47 }
 0xac4   :  { %v611_v36 = vmul.f32 %v1710_v33, %v605_v32 }
 0xac5   :  { %v1988_v34 = vpop.eup %1987 }
 0xac6   :  { %v606_v37 = vmul.f32 %v1988_v34, %v590_v15  ;;  %v617_v41 = vadd.f32 %v1711_v38, %v611_v36 }
 0xac8   :  { %v612_v40 = vmul.f32 %v1710_v33, %v606_v37 }
 0xaca   :  { %v618_v31 = vadd.f32 %v1711_v38, %v612_v40 }
 0xacc   :  { %v623_v42 = vpack.c.bf16 %v618_v31, %v617_v41 }
 0xace   :  { %1846 = vmatmul.mubr.msk.bf16.vlgmr.msra.gmra.mrb[28].mxu1 %vm120_vm2, %v623_v42 }
 0xacf   :  { %1873 = vmatprep.mubr.msk.bf16.mxu1 %vm2043_vm4, %v2042_v3 }
 0xba1   :  { %v668_v9 = vpop.f32.mrb[28].mxu1 }
 0xba2   :  { %v669_v10 = vadd.f32 %v1712_v8, %v668_v9  ;;  %v1847_v11 = vpop.f32.mrb[29].mxu1 }
 0xba3   :  { %v671_v47 = vpop.f32.mrb[30].mxu1 }
 0xba4   :  { %v677_v12 = vmul.f32 0.70710677, %v669_v10  ;;  %v672_v13 = vadd.f32 %v1712_v8, %v671_v47  ;;  %v1848_v14 = vpop.f32.mrb[31].mxu1  ;;  %v675_v62 = vmul.f32 0.5, %v669_v10 }
 0xba6   :  { %v679_v15 = vand.u32 2147483647, %v677_v12  ;;  %v678_v50 = vmul.f32 0.70710677, %v672_v13  ;;  %vm719_vm8 = vcmp.lt.f32.partialorder %v677_v12, 0.0  ;;  %v676_v63 = vmul.f32 0.5, %v672_v13 }
 0xba8   :  { %v681_v16 = vmul.f32 0.3275911, %v679_v15  ;;  %v680_v17 = vand.u32 2147483647, %v678_v50  ;;  %v707_v21 = vsub.f32 0.0, %v679_v15  ;;  %vm720_vm9 = vcmp.lt.f32.partialorder %v678_v50, 0.0 }
 0xbaa   :  { %v683_v18 = vadd.f32 1.0, %v681_v16  ;;  %v682_v19 = vmul.f32 0.3275911, %v680_v17  ;;  %v708_v22 = vsub.f32 0.0, %v680_v17  ;;  %v709_v24 = vmul.f32 %v707_v21, %v679_v15 }
 0xbac   :  { %1989 = vrcp.f32 %v683_v18  ;;  %v684_v20 = vadd.f32 1.0, %v682_v19  ;;  %v710_v28 = vmul.f32 %v708_v22, %v680_v17  ;;  %v711_v29 = vmul.f32 1.442695, %v709_v24  ;;  %v842_v24 = vld [vmem:[%s2686_s3 + $0x28] sm:$0xff] }
 0xbae   :  { %1991 = vrcp.f32 %v684_v20  ;;  %v713_v36 = vmul.f32 1.442695, %v710_v28  ;;  %v845_v28 = vld [vmem:[%s2686_s3 + $0x40] sm:$0xff] }
 0xbaf   :  { %1993 = vpow2.f32 %v711_v29 }
 0xbb0   :  { %1995 = vpow2.f32 %v713_v36 }
 0xbb6   :  { %v1990_v23 = vpop.eup %1989 }
 0xbb7   :  { %v689_v25 = vmul.f32 1.0614054, %v1990_v23 }
 0xbb8   :  { %v1992_v26 = vpop.eup %1991 }
 0xbb9   :  { %v691_v27 = vadd.f32 -1.4531521, %v689_v25  ;;  %v690_v30 = vmul.f32 1.0614054, %v1992_v26  ;;  %v1994_v48 = vpop.eup %1993  ;;  %v843_v25 = vld [vmem:[%s2686_s3 + $0x30] sm:$0xff] }
 0xbba   :  { %v1996_v53 = vpop.eup %1995 }
 0xbbb   :  { %v693_v32 = vmul.f32 %v1990_v23, %v691_v27  ;;  %v692_v33 = vadd.f32 -1.4531521, %v690_v30  ;;  %v844_v27 = vld [vmem:[%s2686_s3 + $0x38] sm:$0xff] }
 0xbbc   :  { %v848_v29 = vpack.c.bf16 %v845_v28, %v844_v27 }
 0xbbd   :  { %v695_v34 = vadd.f32 1.4214138, %v693_v32  ;;  %v694_v37 = vmul.f32 %v1992_v26, %v692_v33 }
 0xbbf   :  { %v697_v38 = vmul.f32 %v1990_v23, %v695_v34  ;;  %v696_v40 = vadd.f32 1.4214138, %v694_v37 }
 0xbc1   :  { %v699_v41 = vadd.f32 -0.28449672, %v697_v38  ;;  %v698_v31 = vmul.f32 %v1992_v26, %v696_v40 }
 0xbc3   :  { %v701_v42 = vmul.f32 %v1990_v23, %v699_v41  ;;  %v700_v43 = vadd.f32 -0.28449672, %v698_v31  ;;  %v1715_v41 = vld [vmem:[%s2684_s2 + $0x1f8] ss:$0 sm:$0xff] }
 0xbc5   :  { %v703_v44 = vadd.f32 0.2548296, %v701_v42  ;;  %v702_v45 = vmul.f32 %v1992_v26, %v700_v43 }
 0xbc7   :  { %v705_v46 = vmul.f32 %v1990_v23, %v703_v44  ;;  %v704_v49 = vadd.f32 0.2548296, %v702_v45  ;;  %v1716_v44 = vld [vmem:[%s2684_s2 + $0x200] ss:$0 sm:$0xff] }
 0xbc9   :  { %v715_v51 = vmul.f32 %v1994_v48, %v705_v46  ;;  %v706_v52 = vmul.f32 %v1992_v26, %v704_v49  ;;  %v847_v26 = vpack.c.bf16 %v843_v25, %v842_v24 }
 0xbcb   :  { %v717_v54 = vsub.f32 1.0, %v715_v51  ;;  %v716_v55 = vmul.f32 %v1996_v53, %v706_v52  ;;  %1870 = vmatpush3.bf16.msra.mxu1 %v847_v26  ;;  %v1717_v51 = vld [vmem:[%s2686_s3 + $0x48] ss:$0 sm:$0xff] }
 0xbcc   :  { %1871 = vmatprep.subr.bf16.mxu1 %v2042_v3 }
 0xbcd   :  { %v721_v56 = vsub.f32 0.0, %v717_v54  ;;  %v718_v57 = vsub.f32 1.0, %v716_v55 }
 0xbcf   :  { %v723_v58 = vsel %vm719_vm8, %v721_v56, %v717_v54  ;;  %v722_v59 = vsub.f32 0.0, %v718_v57  ;;  %1872 = vmatpush3.bf16.msra.mxu1 %v848_v29 }
 0xbd0   :  { %v725_v60 = vadd.f32 1.0, %v723_v58  ;;  %1877 = vmatprep.subr.bf16.mxu1 %v2042_v3 }
 0xbd1   :  { %v724_v61 = vsel %vm720_vm9, %v722_v59, %v718_v57 }
 0xbd2   :  { %v726_v0 = vadd.f32 1.0, %v724_v61  ;;  %v727_v1 = vmul.f32 %v725_v60, %v675_v62 }
 0xbd4   :  { %v728_v2 = vmul.f32 %v726_v0, %v676_v63 }
 0xbd6   :  { %v745_v4 = vpack.c.bf16 %v728_v2, %v727_v1 }
 0xbd8   :  { %1866 = vmatmul.mubr.bf16.vlgmr.msra.gmra.mrb[4].mxu0 %v745_v4 }
 0xbd9   :  { %1897 = vmatprep.mubr.msk.bf16.mxu0 %vm2043_vm4, %v2042_v3 }
 0xcab   :  { %v793_v8 = vpop.f32.mrb[4].mxu0 }
 0xcac   :  { %v794_v9 = vadd.f32 %v1714_v6, %v793_v8  ;;  %v1867_v11 = vpop.f32.mrb[5].mxu0 }
 0xcad   :  { %v796_v47 = vpop.f32.mrb[6].mxu0 }
 0xcae   :  { %v2414_v12 = vadd.f32 %v794_v9, %v2313_v5  ;;  %v797_v10 = vadd.f32 %v1714_v6, %v796_v47  ;;  %v1868_v13 = vpop.f32.mrb[7].mxu0 }
 0xcb0   :  { %v2417_v14 = vadd.f32 %v797_v10, %v2316_v7  ;;  %v804_v15 = vsel %vm120_vm2, %v2414_v12, 0.0 }
 0xcb1   :  { %805 = vadd.xlane.f32.xlu1 %v804_v15 }
 0xcb2   :  { %v807_v50 = vsel %vm124_vm3, %v2417_v14, 0.0 }
 0xcb5   :  { %808 = vadd.xlane.f32.xlu1 %v807_v50 }
 0xd3e   :  { %v806_v16 = vpop.xlane.xlu1 %805 }
 0xd3f   :  { %v810_v17 = vmul.f32 0.03125, %v806_v16 }
 0xd41   :  { %v812_v18 = vsub.f32 %v2414_v12, %v810_v17 }
 0xd42   :  { %v809_v19 = vpop.xlane.xlu1 %808 }
 0xd43   :  { %v811_v5 = vmul.f32 0.03125, %v809_v19  ;;  %v814_v20 = vmul.f32 %v812_v18, %v812_v18 }
 0xd45   :  { %v813_v21 = vsub.f32 %v2417_v14, %v811_v5  ;;  %v816_v7 = vsel %vm120_vm2, %v814_v20, 0.0 }
 0xd46   :  { %817 = vadd.xlane.f32.xlu0 %v816_v7 }
 0xd47   :  { %v815_v22 = vmul.f32 %v813_v21, %v813_v21 }
 0xd49   :  { %v819_v23 = vsel %vm124_vm3, %v815_v22, 0.0 }
 0xd4a   :  { %820 = vadd.xlane.f32.xlu1 %v819_v23 }
 0xdd3   :  { %v818_v30 = vpop.xlane.xlu0 %817 }
 0xdd4   :  { %v822_v32 = vmul.f32 0.03125, %v818_v30 }
 0xdd6   :  { %v824_v33 = vadd.f32 1e-06, %v822_v32 }
 0xdd7   :  { %v821_v34 = vpop.xlane.xlu1 %820 }
 0xdd8   :  { %1997 = vrsqrt.f32 %v824_v33  ;;  %v823_v36 = vmul.f32 0.03125, %v821_v34 }
 0xdda   :  { %v825_v37 = vadd.f32 1e-06, %v823_v36 }
 0xddc   :  { %1999 = vrsqrt.f32 %v825_v37 }
 0xde2   :  { %v1998_v38 = vpop.eup %1997 }
 0xde3   :  { %v828_v40 = vmul.f32 %v1998_v38, %v812_v18 }
 0xde5   :  { %v834_v42 = vmul.f32 %v1715_v41, %v828_v40 }
 0xde6   :  { %v2000_v31 = vpop.eup %1999 }
 0xde7   :  { %v829_v43 = vmul.f32 %v2000_v31, %v813_v21  ;;  %v840_v46 = vadd.f32 %v1716_v44, %v834_v42 }
 0xde9   :  { %v835_v45 = vmul.f32 %v1715_v41, %v829_v43 }
 0xdeb   :  { %v841_v48 = vadd.f32 %v1716_v44, %v835_v45 }
 0xded   :  { %v846_v49 = vpack.c.bf16 %v841_v48, %v840_v46 }
 0xdef   :  { %1874 = vmatmul.mubr.msk.bf16.vlgmr.msra.gmra.mrb[32].mxu1 %vm120_vm2, %v846_v49 }
 0xdf0   :  { %1879 = vmatprep.mubr.msk.bf16.mxu1 %vm2043_vm4, %v2042_v3 }
 0xec2   :  { %v891_v52 = vpop.f32.mrb[32].mxu1 }
 0xec3   :  { %v1875_v53 = vpop.f32.mrb[33].mxu1  ;;  %v892_v55 = vadd.f32 %v1717_v51, %v891_v52 }
 0xec4   :  { %v894_v54 = vpop.f32.mrb[34].mxu1 }
 0xec5   :  { %v895_v56 = vadd.f32 %v1717_v51, %v894_v54  ;;  %v1876_v57 = vpop.f32.mrb[35].mxu1 }
 0xec7   :  { %v2453_v58 = vpack.c.bf16 %v895_v56, %v892_v55 }
 0xec9   :  { %900 = vrot.lane.b32.xlu1 %v2453_v58, %s2044_s20 }
 0xf3b   :  { %v901_v59 = vpop.permute.xlu1 %900 }
 0xf3c   :  { %v906_v60 = vsel %vm221_vm5, %v901_v59, 0  ;;  %v1157_v59 = vld [vmem:[%s2684_s2 + $0x220] sm:$0xff] }
 0xf3d   :  { %1878 = vmatpush3.bf16.xpose.msra.mxu1 %v906_v60 }
 0xf3e   :  { %1883 = vmatprep.subr.bf16.mxu1 %v2042_v3 }
 0xf44   :  { %1880 = vmatmul.mubr.msk.bf16.vlgmr.msra.gmra.mrb[36].mxu1 %vm221_vm5, %v2453_v58 }
 0xf45   :  { %1885 = vmatprep.mubr.msk.bf16.mxu1 %vm2043_vm4, %v2042_v3 }
0x1017   :  { %v942_v61 = vpop.f32.mrb[36].mxu1 }
0x1018   :  { %v949_v62 = vmul.f32 0.25, %v942_v61  ;;  %v1881_v63 = vpop.f32.mrb[37].mxu1 }
0x1019   :  { %v945_v0 = vpop.f32.mrb[38].mxu1 }
0x101a   :  { %v950_v1 = vmul.f32 0.25, %v945_v0  ;;  %v1882_v2 = vpop.f32.mrb[39].mxu1  ;;  %v951_v4 = vadd.f32 %v949_v62, %v2245_v35 }
0x101b   :  { %v1026_v2 = vld [vmem:[%s2684_s2 + $0x210] sm:$0xff] }
0x101c   :  { %v953_v6 = vsel %vm273_vm6, %v951_v4, -inf  ;;  %v952_v8 = vadd.f32 %v950_v1, %v2250_v39  ;;  %v1025_v1 = vld [vmem:[%s2684_s2 + $0x208] sm:$0xff] }
0x101d   :  { %954 = vmax.xlane.f32.xlu1 %v953_v6 }
0x101e   :  { %v956_v9 = vsel %vm277_vm7, %v952_v8, -inf }
0x101f   :  { %957 = vmax.xlane.f32.xlu0 %v956_v9  ;;  %v1028_v9 = vpack.c.bf16 %v1026_v2, %v1025_v1  ;;  %v1408_v1 = vld [vmem:[%s2684_s2 + $0x248] sm:$0xff] }
0x102e   :  { %1031 = vrot.lane.b32.xlu1 %v2453_v58, %s2045_s21 }
0x10aa   :  { %v955_v11 = vpop.xlane.xlu1 %954 }
0x10ab   :  { %v959_v47 = vsub.f32 %v951_v4, %v955_v11 }
0x10ac   :  { %v958_v10 = vpop.xlane.xlu0 %957 }
0x10ad   :  { %v961_v13 = vmul.f32 1.442695, %v959_v47  ;;  %v960_v15 = vsub.f32 %v952_v8, %v958_v10 }
0x10ae   :  { %v1032_v26 = vpop.permute.xlu1 %1031 }
0x10af   :  { %2001 = vpow2.f32 %v961_v13  ;;  %v963_v50 = vmul.f32 1.442695, %v960_v15  ;;  %v1037_v28 = vsel %vm221_vm5, %v1032_v26, 0 }
0x10b1   :  { %2003 = vpow2.f32 %v963_v50 }
0x10b9   :  { %v2002_v16 = vpop.eup %2001 }
0x10ba   :  { %v965_v17 = vsel %vm273_vm6, %v2002_v16, 0.0 }
0x10bb   :  { %v2004_v18 = vpop.eup %2003  ;;  %966 = vadd.xlane.f32.xlu0 %v965_v17 }
0x10bc   :  { %v968_v19 = vsel %vm277_vm7, %v2004_v18, 0.0 }
0x10bf   :  { %969 = vadd.xlane.f32.xlu0 %v968_v19 }
0x10d5   :  { %976 = vrot.lane.b32.xlu0 %v2453_v58, %s2047_s1 }
0x10d9   :  { %1029 = vrot.lane.b32.xlu0 %v2453_v58, %s2046_s22 }
0x1148   :  { %v967_v5 = vpop.xlane.xlu0 %966 }
0x1149   :  { %2005 = vrcp.f32 %v967_v5 }
0x114c   :  { %v970_v20 = vpop.xlane.xlu0 %969 }
0x114d   :  { %2007 = vrcp.f32 %v970_v20 }
0x1150   :  { %v977_v21 = vpop.permute.xlu0 %976 }
0x1151   :  { %v982_v7 = vsel %vm53_vm1, %v977_v21, 0 }
0x1152   :  { %1884 = vmatpush3.bf16.msra.mxu1 %v982_v7  ;;  %v1725_v7 = vld [vmem:[%s2684_s2 + $0x228] ss:$0 sm:$0xff] }
0x1153   :  { %1889 = vmatprep.subr.bf16.mxu1 %v2042_v3  ;;  %v2006_v22 = vpop.eup %2005 }
0x1154   :  { %v972_v24 = vmul.f32 %v2006_v22, %v2002_v16  ;;  %v1030_v29 = vpop.permute.xlu0 %1029 }
0x1157   :  { %v2008_v23 = vpop.eup %2007 }
0x1158   :  { %v974_v25 = vmul.f32 %v2008_v23, %v2004_v18 }
0x115a   :  { %v975_v27 = vpack.c.bf16 %v974_v25, %v972_v24 }
0x115c   :  { %1886 = vmatmul.mubr.msk.bf16.vlgmr.msra.gmra.mrb[40].mxu1 %vm273_vm6, %v975_v27 }
0x115d   :  { %1890 = vmatpush3.bf16.xpose.msra.mxu1 %v1037_v28  ;;  %1891 = vmatprep.mubr.msk.bf16.mxu1 %vm2043_vm4, %v2042_v3 }
0x115e   :  { %1901 = vmatprep.subr.bf16.mxu1 %v2042_v3 }
0x1164   :  { %1892 = vmatmul.mubr.msk.bf16.vlgmr.msra.gmra.mrb[44].mxu1 %vm221_vm5, %v1030_v29 }
0x1165   :  { %1903 = vmatprep.mubr.msk.bf16.mxu1 %vm2043_vm4, %v2042_v3 }
0x122f   :  { %v1018_v30 = vpop.f32.mrb[40].mxu1 }
0x1230   :  { %v1887_v32 = vpop.f32.mrb[41].mxu1 }
0x1231   :  { %v1021_v33 = vpop.f32.mrb[42].mxu1 }
0x1232   :  { %v1027_v34 = vpack.c.bf16 %v1021_v33, %v1018_v30  ;;  %v1888_v36 = vpop.f32.mrb[43].mxu1 }
0x1237   :  { %v1073_v37 = vpop.f32.mrb[44].mxu1 }
0x1238   :  { %v1080_v38 = vmul.f32 0.25, %v1073_v37  ;;  %v1893_v40 = vpop.f32.mrb[45].mxu1 }
0x1239   :  { %v1076_v41 = vpop.f32.mrb[46].mxu1 }
0x123a   :  { %v1081_v31 = vmul.f32 0.25, %v1076_v41  ;;  %v1894_v42 = vpop.f32.mrb[47].mxu1  ;;  %v1082_v43 = vadd.f32 %v1080_v38, %v2245_v35 }
0x123b   :  { %v1298_v42 = vld [vmem:[%s2688_s4 + $0x30] sm:$0xff] }
0x123c   :  { %v1084_v44 = vsel %vm273_vm6, %v1082_v43, -inf  ;;  %v1083_v45 = vadd.f32 %v1081_v31, %v2250_v39  ;;  %v1156_v39 = vld [vmem:[%s2684_s2 + $0x218] sm:$0xff]  ;;  %v1297_v31 = vld [vmem:[%s2688_s4 + $0x28] sm:$0xff] }
0x123d   :  { %1085 = vmax.xlane.f32.xlu0 %v1084_v44  ;;  %v1159_v60 = vpack.c.bf16 %v1157_v59, %v1156_v39  ;;  %v1299_v44 = vld [vmem:[%s2688_s4 + $0x38] sm:$0xff] }
0x123e   :  { %v1087_v46 = vsel %vm277_vm7, %v1083_v45, -inf }
0x123f   :  { %1088 = vmax.xlane.f32.xlu1 %v1087_v46  ;;  %1902 = vmatpush3.bf16.msra.mxu1 %v1159_v60  ;;  %v1727_v60 = vld [vmem:[%s2684_s2 + $0x238] ss:$0 sm:$0xff] }
0x1240   :  { %1913 = vmatprep.subr.bf16.mxu1 %v2042_v3 }
0x12ca   :  { %v1086_v48 = vpop.xlane.xlu0 %1085 }
0x12cb   :  { %v1090_v49 = vsub.f32 %v1082_v43, %v1086_v48  ;;  %v1302_v43 = vpack.c.bf16 %v1298_v42, %v1297_v31 }
0x12cc   :  { %v1089_v51 = vpop.xlane.xlu1 %1088 }
0x12cd   :  { %v1092_v52 = vmul.f32 1.442695, %v1090_v49  ;;  %v1091_v53 = vsub.f32 %v1083_v45, %v1089_v51  ;;  %v1300_v45 = vld [vmem:[%s2688_s4 + $0x40] sm:$0xff] }
0x12ce   :  { %v1303_v46 = vpack.c.bf16 %v1300_v45, %v1299_v44 }
0x12cf   :  { %2009 = vpow2.f32 %v1092_v52  ;;  %v1094_v54 = vmul.f32 1.442695, %v1091_v53 }
0x12d1   :  { %2011 = vpow2.f32 %v1094_v54 }
0x12d9   :  { %v2010_v55 = vpop.eup %2009 }
0x12da   :  { %v1096_v56 = vsel %vm273_vm6, %v2010_v55, 0.0 }
0x12db   :  { %v2012_v35 = vpop.eup %2011  ;;  %1097 = vadd.xlane.f32.xlu0 %v1096_v56 }
0x12dc   :  { %v1099_v57 = vsel %vm277_vm7, %v2012_v35, 0.0 }
0x12df   :  { %1100 = vadd.xlane.f32.xlu0 %v1099_v57 }
0x12f5   :  { %1107 = vrot.lane.b32.xlu0 %v2453_v58, %s2048_s27 }
0x1368   :  { %v1098_v61 = vpop.xlane.xlu0 %1097 }
0x1369   :  { %2013 = vrcp.f32 %v1098_v61 }
0x136c   :  { %v1101_v62 = vpop.xlane.xlu0 %1100 }
0x136d   :  { %2015 = vrcp.f32 %v1101_v62 }
0x1370   :  { %v1108_v63 = vpop.permute.xlu0 %1107 }
0x1371   :  { %v1113_v0 = vsel %vm53_vm1, %v1108_v63, 0 }
0x1372   :  { %1896 = vmatpush3.bf16.msra.mxu0 %v1113_v0 }
0x1373   :  { %1907 = vmatprep.subr.bf16.mxu0 %v2042_v3  ;;  %v2014_v58 = vpop.eup %2013 }
0x1374   :  { %v1103_v6 = vmul.f32 %v2014_v58, %v2010_v55  ;;  %v1407_v58 = vld [vmem:[%s2684_s2 + $0x240] sm:$0xff] }
0x1375   :  { %v1424_v2 = vpack.c.bf16 %v1408_v1, %v1407_v58 }
0x1377   :  { %v2016_v4 = vpop.eup %2015 }
0x1378   :  { %v1105_v8 = vmul.f32 %v2016_v4, %v2012_v35  ;;  %v1726_v35 = vld [vmem:[%s2684_s2 + $0x230] ss:$0 sm:$0xff] }
0x1379   :  { %v1409_v4 = vld [vmem:[%s2684_s2 + $0x250] sm:$0xff] }
0x137a   :  { %v1106_v11 = vpack.c.bf16 %v1105_v8, %v1103_v6  ;;  %v1410_v6 = vld [vmem:[%s2684_s2 + $0x258] sm:$0xff] }
0x137b   :  { %v1425_v8 = vpack.c.bf16 %v1410_v6, %v1409_v4 }
0x137c   :  { %1898 = vmatmul.mubr.msk.bf16.vlgmr.msra.gmra.mrb[8].mxu0 %vm273_vm6, %v1106_v11  ;;  %v1412_v11 = vld [vmem:[%s2684_s2 + $0x268] sm:$0xff] }
0x137d   :  { %1908 = vmatpush3.bf16.msra.mxu0 %v1028_v9  ;;  %1909 = vmatprep.mubr.msk.bf16.mxu0 %vm2043_vm4, %v2042_v3  ;;  %v1411_v9 = vld [vmem:[%s2684_s2 + $0x260] sm:$0xff] }
0x137e   :  { %1921 = vmatprep.subr.bf16.mxu0 %v2042_v3 }
0x1384   :  { %1910 = vmatmul.mubr.msk.bf16.vlgmr.msra.gmra.mrb[12].mxu0 %vm221_vm5, %v1027_v34 }
0x1385   :  { %1937 = vmatprep.mubr.msk.bf16.mxu0 %vm2043_vm4, %v2042_v3  ;;  %1922 = vmatpush3.bf16.msra.mxu0 %v1424_v2 }
0x1386   :  { %1923 = vmatprep.subr.bf16.mxu0 %v2042_v3 }
0x1389   :  { %1924 = vmatpush3.bf16.msra.mxu0 %v1425_v8 }
0x138a   :  { %1925 = vmatprep.subr.bf16.mxu0 %v2042_v3 }
0x144f   :  { %v1149_v47 = vpop.f32.mrb[8].mxu0 }
0x1450   :  { %v1899_v10 = vpop.f32.mrb[9].mxu0 }
0x1451   :  { %v1152_v13 = vpop.f32.mrb[10].mxu0  ;;  %v1413_v10 = vld [vmem:[%s2684_s2 + $0x270] sm:$0xff] }
0x1452   :  { %v1158_v15 = vpack.c.bf16 %v1152_v13, %v1149_v47  ;;  %v1900_v50 = vpop.f32.mrb[11].mxu0  ;;  %v1426_v47 = vpack.c.bf16 %v1412_v11, %v1411_v9  ;;  %v1414_v13 = vld [vmem:[%s2684_s2 + $0x278] sm:$0xff] }
0x1453   :  { %v1415_v50 = vld [vmem:[%s2684_s2 + $0x280] sm:$0xff] }
0x1454   :  { %1904 = vmatmul.mubr.msk.bf16.vlgmr.msra.gmra.mrb[48].mxu1 %vm221_vm5, %v1158_v15  ;;  %1926 = vmatpush3.bf16.msra.mxu0 %v1426_v47  ;;  %v1427_v15 = vpack.c.bf16 %v1414_v13, %v1413_v10 }
0x1455   :  { %1917 = vmatprep.mubr.msk.bf16.mxu1 %vm2043_vm4, %v2042_v3  ;;  %1914 = vmatpush3.bf16.msra.mxu1 %v1302_v43 }
0x1456   :  { %1915 = vmatprep.subr.bf16.mxu1 %v2042_v3  ;;  %1927 = vmatprep.subr.bf16.mxu0 %v2042_v3 }
0x1457   :  { %v1241_v16 = vpop.f32.mrb[12].mxu0 }
0x1458   :  { %v1911_v17 = vpop.f32.mrb[13].mxu0  ;;  %1928 = vmatpush3.bf16.msra.mxu0 %v1427_v15 }
0x1459   :  { %v1244_v18 = vpop.f32.mrb[14].mxu0  ;;  %1916 = vmatpush3.bf16.msra.mxu1 %v1303_v46  ;;  %1929 = vmatprep.subr.bf16.mxu0 %v2042_v3 }
0x145a   :  { %v1912_v19 = vpop.f32.mrb[15].mxu0  ;;  %1941 = vmatprep.subr.bf16.mxu1 %v2042_v3 }
0x145b   :  { %v1418_v19 = vld [vmem:[%s2684_s2 + $0x298] sm:$0xff] }
0x1527   :  { %v1197_v5 = vpop.f32.mrb[48].mxu1 }
0x1528   :  { %v1242_v20 = vadd.f32 %v1241_v16, %v1197_v5  ;;  %v1905_v21 = vpop.f32.mrb[49].mxu1  ;;  %v1416_v16 = vld [vmem:[%s2684_s2 + $0x288] sm:$0xff] }
0x1529   :  { %v1200_v22 = vpop.f32.mrb[50].mxu1  ;;  %v1428_v17 = vpack.c.bf16 %v1416_v16, %v1415_v50  ;;  %v1420_v21 = vld [vmem:[%s2684_s2 + $0x2a8] sm:$0xff] }
0x152a   :  { %v1248_v23 = vadd.f32 %v1242_v20, %v2414_v12  ;;  %v1245_v24 = vadd.f32 %v1244_v18, %v1200_v22  ;;  %v1906_v25 = vpop.f32.mrb[51].mxu1  ;;  %v1417_v18 = vld [vmem:[%s2684_s2 + $0x290] sm:$0xff]  ;;  %v1419_v20 = vld [vmem:[%s2684_s2 + $0x2a0] sm:$0xff] }
0x152b   :  { %1930 = vmatpush3.bf16.msra.mxu0 %v1428_v17  ;;  %v1429_v5 = vpack.c.bf16 %v1418_v19, %v1417_v18  ;;  %v1421_v22 = vld [vmem:[%s2684_s2 + $0x2b0] sm:$0xff]  ;;  %v1728_v25 = vld [vmem:[%s2688_s4 + $0x48] ss:$0 sm:$0xff] }
0x152c   :  { %v2522_v26 = vadd.f32 %v1725_v7, %v1248_v23  ;;  %v1249_v27 = vadd.f32 %v1245_v24, %v2417_v14  ;;  %1931 = vmatprep.subr.bf16.mxu0 %v2042_v3  ;;  %v1422_v23 = vld [vmem:[%s2684_s2 + $0x2b8] sm:$0xff] }
0x152d   :  { %v1431_v24 = vpack.c.bf16 %v1422_v23, %v1421_v22  ;;  %v1730_v22 = vld [vmem:[%s2684_s2 + $0x2c0] ss:$0 sm:$0xff] }
0x152e   :  { %v2525_v28 = vadd.f32 %v1725_v7, %v1249_v27  ;;  %v1259_v29 = vsel %vm120_vm2, %v2522_v26, 0.0  ;;  %v1430_v7 = vpack.c.bf16 %v1420_v21, %v1419_v20 }
0x152f   :  { %1260 = vadd.xlane.f32.xlu1 %v1259_v29  ;;  %1932 = vmatpush3.bf16.msra.mxu0 %v1429_v5 }
0x1530   :  { %v1262_v30 = vsel %vm124_vm3, %v2525_v28, 0.0  ;;  %1933 = vmatprep.subr.bf16.mxu0 %v2042_v3 }
0x1533   :  { %1263 = vadd.xlane.f32.xlu1 %v1262_v30  ;;  %1934 = vmatpush3.bf16.msra.mxu0 %v1430_v7 }
0x1534   :  { %1935 = vmatprep.subr.bf16.mxu0 %v2042_v3 }
0x1537   :  { %1936 = vmatpush3.bf16.msra.mxu0 %v1431_v24 }
0x15bc   :  { %v1261_v32 = vpop.xlane.xlu1 %1260 }
0x15bd   :  { %v1265_v33 = vmul.f32 0.03125, %v1261_v32 }
0x15bf   :  { %v1267_v12 = vsub.f32 %v2522_v26, %v1265_v33 }
0x15c0   :  { %v1264_v34 = vpop.xlane.xlu1 %1263 }
0x15c1   :  { %v1266_v36 = vmul.f32 0.03125, %v1264_v34  ;;  %v1269_v37 = vmul.f32 %v1267_v12, %v1267_v12 }
0x15c3   :  { %v1268_v38 = vsub.f32 %v2525_v28, %v1266_v36  ;;  %v1271_v14 = vsel %vm120_vm2, %v1269_v37, 0.0 }
0x15c4   :  { %1272 = vadd.xlane.f32.xlu1 %v1271_v14 }
0x15c5   :  { %v1270_v40 = vmul.f32 %v1268_v38, %v1268_v38 }
0x15c7   :  { %v1274_v41 = vsel %vm124_vm3, %v1270_v40, 0.0 }
0x15c8   :  { %1275 = vadd.xlane.f32.xlu1 %v1274_v41 }
0x1651   :  { %v1273_v48 = vpop.xlane.xlu1 %1272 }
0x1652   :  { %v1277_v49 = vmul.f32 0.03125, %v1273_v48 }
0x1654   :  { %v1279_v51 = vadd.f32 1e-06, %v1277_v49 }
0x1655   :  { %v1276_v52 = vpop.xlane.xlu1 %1275 }
0x1656   :  { %2017 = vrsqrt.f32 %v1279_v51  ;;  %v1278_v53 = vmul.f32 0.03125, %v1276_v52 }
0x1658   :  { %v1280_v54 = vadd.f32 1e-06, %v1278_v53 }
0x165a   :  { %2019 = vrsqrt.f32 %v1280_v54 }
0x1660   :  { %v2018_v55 = vpop.eup %2017 }
0x1661   :  { %v1283_v56 = vmul.f32 %v2018_v55, %v1267_v12 }
0x1663   :  { %v1289_v39 = vmul.f32 %v1726_v35, %v1283_v56 }
0x1664   :  { %v2020_v57 = vpop.eup %2019 }
0x1665   :  { %v1284_v59 = vmul.f32 %v2020_v57, %v1268_v38  ;;  %v1295_v62 = vadd.f32 %v1727_v60, %v1289_v39 }
0x1667   :  { %v1290_v61 = vmul.f32 %v1726_v35, %v1284_v59 }
0x1669   :  { %v1296_v63 = vadd.f32 %v1727_v60, %v1290_v61 }
0x166b   :  { %v1301_v0 = vpack.c.bf16 %v1296_v63, %v1295_v62 }
0x166d   :  { %1918 = vmatmul.mubr.msk.bf16.vlgmr.msra.gmra.mrb[52].mxu1 %vm120_vm2, %v1301_v0 }
0x166e   :  { %1945 = vmatprep.mubr.msk.bf16.mxu1 %vm2043_vm4, %v2042_v3 }
0x1740   :  { %v1346_v27 = vpop.f32.mrb[52].mxu1 }
0x1741   :  { %v1347_v29 = vadd.f32 %v1728_v25, %v1346_v27  ;;  %v1919_v30 = vpop.f32.mrb[53].mxu1 }
0x1742   :  { %v1349_v32 = vpop.f32.mrb[54].mxu1 }
0x1743   :  { %v1355_v33 = vmul.f32 0.70710677, %v1347_v29  ;;  %v1350_v12 = vadd.f32 %v1728_v25, %v1349_v32  ;;  %v1920_v34 = vpop.f32.mrb[55].mxu1  ;;  %v1353_v18 = vmul.f32 0.5, %v1347_v29 }
0x1745   :  { %v1357_v36 = vand.u32 2147483647, %v1355_v33  ;;  %v1356_v37 = vmul.f32 0.70710677, %v1350_v12  ;;  %vm1397_vm10 = vcmp.lt.f32.partialorder %v1355_v33, 0.0  ;;  %v1354_v19 = vmul.f32 0.5, %v1350_v12 }
0x1747   :  { %v1359_v38 = vmul.f32 0.3275911, %v1357_v36  ;;  %v1358_v14 = vand.u32 2147483647, %v1356_v37  ;;  %v1385_v42 = vsub.f32 0.0, %v1357_v36  ;;  %vm1398_vm11 = vcmp.lt.f32.partialorder %v1356_v37, 0.0 }
0x1749   :  { %v1361_v40 = vadd.f32 1.0, %v1359_v38  ;;  %v1360_v41 = vmul.f32 0.3275911, %v1358_v14  ;;  %v1386_v43 = vsub.f32 0.0, %v1358_v14  ;;  %v1387_v45 = vmul.f32 %v1385_v42, %v1357_v36 }
0x174b   :  { %2021 = vrcp.f32 %v1361_v40  ;;  %v1362_v31 = vadd.f32 1.0, %v1360_v41  ;;  %v1388_v51 = vmul.f32 %v1386_v43, %v1358_v14  ;;  %v1389_v52 = vmul.f32 1.442695, %v1387_v45 }
0x174d   :  { %2023 = vrcp.f32 %v1362_v31  ;;  %v1391_v35 = vmul.f32 1.442695, %v1388_v51 }
0x174e   :  { %2025 = vpow2.f32 %v1389_v52 }
0x174f   :  { %2027 = vpow2.f32 %v1391_v35 }
0x1755   :  { %v2022_v44 = vpop.eup %2021 }
0x1756   :  { %v1367_v46 = vmul.f32 1.0614054, %v2022_v44 }
0x1757   :  { %v2024_v48 = vpop.eup %2023 }
0x1758   :  { %v1369_v49 = vadd.f32 -1.4531521, %v1367_v46  ;;  %v1368_v53 = vmul.f32 1.0614054, %v2024_v48  ;;  %v2026_v2 = vpop.eup %2025  ;;  %v1522_v46 = vld [vmem:[%s2684_s2 + $0xe8] sm:$0xff] }
0x1759   :  { %v2028_v9 = vpop.eup %2027 }
0x175a   :  { %v1371_v54 = vmul.f32 %v2022_v44, %v1369_v49  ;;  %v1370_v55 = vadd.f32 -1.4531521, %v1368_v53 }
0x175c   :  { %v1373_v56 = vadd.f32 1.4214138, %v1371_v54  ;;  %v1372_v57 = vmul.f32 %v2024_v48, %v1370_v55 }
0x175e   :  { %v1375_v39 = vmul.f32 %v2022_v44, %v1373_v56  ;;  %v1374_v59 = vadd.f32 1.4214138, %v1372_v57  ;;  %v1731_v57 = vld [vmem:[%s2684_s2 + $0xc8] ss:$0 sm:$0xff] }
0x1760   :  { %v1377_v60 = vadd.f32 -0.28449672, %v1375_v39  ;;  %v1376_v61 = vmul.f32 %v2024_v48, %v1374_v59  ;;  %v1732_v59 = vld [vmem:[%s2684_s2 + $0xd0] ss:$0 sm:$0xff] }
0x1762   :  { %v1379_v62 = vmul.f32 %v2022_v44, %v1377_v60  ;;  %v1378_v63 = vadd.f32 -0.28449672, %v1376_v61 }
0x1764   :  { %v1381_v0 = vadd.f32 0.2548296, %v1379_v62  ;;  %v1380_v58 = vmul.f32 %v2024_v48, %v1378_v63 }
0x1766   :  { %v1383_v1 = vmul.f32 %v2022_v44, %v1381_v0  ;;  %v1382_v4 = vadd.f32 0.2548296, %v1380_v58  ;;  %v1521_v44 = vld [vmem:[%s2684_s2 + $0xe0] sm:$0xff] }
0x1768   :  { %v1393_v6 = vmul.f32 %v2026_v2, %v1383_v1  ;;  %v1384_v8 = vmul.f32 %v2024_v48, %v1382_v4  ;;  %v1523_v48 = vld [vmem:[%s2684_s2 + $0xf0] sm:$0xff]  ;;  %v1630_v2 = vld [vmem:[%s2684_s2 + $0x100] sm:$0xff]  ;;  %v1631_v4 = vld [vmem:[%s2684_s2 + $0x108] sm:$0xff] }
0x1769   :  { %v1526_v49 = vpack.c.bf16 %v1523_v48, %v1522_v46 }
0x176a   :  { %v1395_v11 = vsub.f32 1.0, %v1393_v6  ;;  %v1394_v47 = vmul.f32 %v2028_v9, %v1384_v8  ;;  %v1635_v6 = vpack.c.bf16 %v1631_v4, %v1630_v2  ;;  %v1632_v8 = vld [vmem:[%s2684_s2 + $0x110] sm:$0xff]  ;;  %v1633_v9 = vld [vmem:[%s2684_s2 + $0x118] sm:$0xff]  ;;  %v1735_v2 = vld [vmem:[%s2684_s2 + $0x120] ss:$0 sm:$0xff] }
0x176c   :  { %v1399_v10 = vsub.f32 0.0, %v1395_v11  ;;  %v1396_v13 = vsub.f32 1.0, %v1394_v47  ;;  %v1733_v47 = vld [vmem:[%s2684_s2 + $0xf8] ss:$0 sm:$0xff] }
0x176e   :  { %v1401_v15 = vsel %vm1397_vm10, %v1399_v10, %v1395_v11  ;;  %v1400_v50 = vsub.f32 0.0, %v1396_v13  ;;  %v1636_v11 = vpack.c.bf16 %v1633_v9, %v1632_v8 }
0x176f   :  { %v1403_v16 = vadd.f32 1.0, %v1401_v15 }
0x1770   :  { %v1402_v17 = vsel %vm1398_vm11, %v1400_v50, %v1396_v13 }
0x1771   :  { %v1404_v5 = vadd.f32 1.0, %v1402_v17  ;;  %v1405_v20 = vmul.f32 %v1403_v16, %v1353_v18 }
0x1773   :  { %v1406_v21 = vmul.f32 %v1404_v5, %v1354_v19 }
0x1775   :  { %v1423_v7 = vpack.c.bf16 %v1406_v21, %v1405_v20 }
0x1777   :  { %1938 = vmatmul.mubr.bf16.vlgmr.msra.gmra.mrb[16].mxu0 %v1423_v7 }
0x184a   :  { %v1471_v23 = vpop.f32.mrb[16].mxu0 }
0x184b   :  { %v1472_v24 = vadd.f32 %v1730_v22, %v1471_v23  ;;  %v1939_v25 = vpop.f32.mrb[17].mxu0 }
0x184c   :  { %v1474_v27 = vpop.f32.mrb[18].mxu0 }
0x184d   :  { %v1475_v30 = vadd.f32 %v1730_v22, %v1474_v27  ;;  %v1940_v32 = vpop.f32.mrb[19].mxu0  ;;  %v1478_v33 = vadd.f32 %v1472_v24, %v2522_v26 }
0x184f   :  { %v1482_v29 = vsel %vm120_vm2, %v1478_v33, 0.0  ;;  %v1479_v12 = vadd.f32 %v1475_v30, %v2525_v28  ;;  %v1520_v28 = vld [vmem:[%s2684_s2 + $0xd8] sm:$0xff] }
0x1850   :  { %1483 = vadd.xlane.f32.xlu1 %v1482_v29  ;;  %v1525_v45 = vpack.c.bf16 %v1521_v44, %v1520_v28 }
0x1851   :  { %v1485_v34 = vsel %vm124_vm3, %v1479_v12, 0.0 }
0x1852   :  { %1486 = vadd.xlane.f32.xlu0 %v1485_v34  ;;  %1942 = vmatpush3.bf16.msra.mxu1 %v1525_v45 }
0x1853   :  { %1943 = vmatprep.subr.bf16.mxu1 %v2042_v3 }
0x1856   :  { %1944 = vmatpush3.bf16.msra.mxu1 %v1526_v49 }
0x1857   :  { %1949 = vmatprep.subr.bf16.mxu1 %v2042_v3 }
0x18dd   :  { %v1484_v36 = vpop.xlane.xlu1 %1483 }
0x18de   :  { %v1488_v37 = vmul.f32 0.03125, %v1484_v36 }
0x18df   :  { %v1487_v38 = vpop.xlane.xlu0 %1486 }
0x18e0   :  { %v1490_v14 = vsub.f32 %v1478_v33, %v1488_v37  ;;  %v1489_v40 = vmul.f32 0.03125, %v1487_v38 }
0x18e2   :  { %v1491_v41 = vsub.f32 %v1479_v12, %v1489_v40  ;;  %v1492_v31 = vmul.f32 %v1490_v14, %v1490_v14 }
0x18e4   :  { %v1494_v42 = vsel %vm120_vm2, %v1492_v31, 0.0  ;;  %v1493_v43 = vmul.f32 %v1491_v41, %v1491_v41 }
0x18e5   :  { %1495 = vadd.xlane.f32.xlu1 %v1494_v42 }
0x18e6   :  { %v1497_v26 = vsel %vm124_vm3, %v1493_v43, 0.0 }
0x18e9   :  { %1498 = vadd.xlane.f32.xlu1 %v1497_v26 }
0x1972   :  { %v1496_v51 = vpop.xlane.xlu1 %1495 }
0x1973   :  { %v1500_v52 = vmul.f32 0.03125, %v1496_v51 }
0x1975   :  { %v1502_v53 = vadd.f32 1e-06, %v1500_v52 }
0x1976   :  { %v1499_v54 = vpop.xlane.xlu1 %1498 }
0x1977   :  { %2029 = vrsqrt.f32 %v1502_v53  ;;  %v1501_v55 = vmul.f32 0.03125, %v1499_v54 }
0x1979   :  { %v1503_v56 = vadd.f32 1e-06, %v1501_v55 }
0x197b   :  { %2031 = vrsqrt.f32 %v1503_v56 }
0x1981   :  { %v2030_v35 = vpop.eup %2029 }
0x1982   :  { %v1506_v39 = vmul.f32 %v2030_v35, %v1490_v14 }
0x1984   :  { %v1512_v60 = vmul.f32 %v1731_v57, %v1506_v39 }
0x1985   :  { %v2032_v61 = vpop.eup %2031 }
0x1986   :  { %v1507_v62 = vmul.f32 %v2032_v61, %v1491_v41  ;;  %v1518_v63 = vadd.f32 %v1732_v59, %v1512_v60 }
0x1988   :  { %v1513_v0 = vmul.f32 %v1731_v57, %v1507_v62  ;;  %1686 = vst.msk [vmem:[%s2689_s5] sm:$0xff] %vm120_vm2, %v1518_v63 }
0x198a   :  { %v1519_v58 = vadd.f32 %v1732_v59, %v1513_v0 }
0x198c   :  { %v1524_v1 = vpack.c.bf16 %v1519_v58, %v1518_v63  ;;  %1687 = vst.msk [vmem:[%s2689_s5 + $0x8] sm:$0x3] %vm124_vm3, %v1519_v58 }
0x198e   :  { %1946 = vmatmul.mubr.msk.bf16.vlgmr.msra.gmra.mrb[56].mxu1 %vm120_vm2, %v1524_v1 }
0x198f   :  { %1953 = vmatprep.mubr.msk.bf16.mxu1 %vm2043_vm4, %v2042_v3  ;;  %1950 = vmatpush3.bf16.msra.mxu1 %v1635_v6 }
0x1990   :  { %1951 = vmatprep.subr.bf16.mxu1 %v2042_v3 }
0x1993   :  { %1952 = vmatpush3.bf16.msra.mxu1 %v1636_v11 }
0x1a61   :  { %v1569_v10 = vpop.f32.mrb[56].mxu1 }
0x1a62   :  { %v1570_v13 = vadd.f32 %v1733_v47, %v1569_v10  ;;  %v1947_v15 = vpop.f32.mrb[57].mxu1 }
0x1a63   :  { %v1572_v50 = vpop.f32.mrb[58].mxu1 }
0x1a64   :  { %v1578_v16 = vmul.f32 0.70710677, %v1570_v13  ;;  %v1573_v3 = vadd.f32 %v1733_v47, %v1572_v50  ;;  %v1948_v17 = vpop.f32.mrb[59].mxu1  ;;  %v1576_v61 = vmul.f32 0.5, %v1570_v13 }
0x1a66   :  { %v1580_v18 = vand.u32 2147483647, %v1578_v16  ;;  %v1579_v19 = vmul.f32 0.70710677, %v1573_v3  ;;  %vm1620_vm12 = vcmp.lt.f32.partialorder %v1578_v16, 0.0  ;;  %v1577_v62 = vmul.f32 0.5, %v1573_v3 }
0x1a68   :  { %v1582_v5 = vmul.f32 0.3275911, %v1580_v18  ;;  %v1581_v20 = vand.u32 2147483647, %v1579_v19  ;;  %v1608_v23 = vsub.f32 0.0, %v1580_v18  ;;  %vm1621_vm13 = vcmp.lt.f32.partialorder %v1579_v19, 0.0 }
0x1a6a   :  { %v1584_v21 = vadd.f32 1.0, %v1582_v5  ;;  %v1583_v7 = vmul.f32 0.3275911, %v1581_v20  ;;  %v1609_v24 = vsub.f32 0.0, %v1581_v20  ;;  %v1610_v27 = vmul.f32 %v1608_v23, %v1580_v18 }
0x1a6c   :  { %2033 = vrcp.f32 %v1584_v21  ;;  %v1585_v22 = vadd.f32 1.0, %v1583_v7  ;;  %v1611_v29 = vmul.f32 %v1609_v24, %v1581_v20  ;;  %v1612_v12 = vmul.f32 1.442695, %v1610_v27 }
0x1a6e   :  { %2035 = vrcp.f32 %v1585_v22  ;;  %v1614_v14 = vmul.f32 1.442695, %v1611_v29 }
0x1a6f   :  { %2037 = vpow2.f32 %v1612_v12 }
0x1a70   :  { %2039 = vpow2.f32 %v1614_v14 }
0x1a76   :  { %v2034_v25 = vpop.eup %2033 }
0x1a77   :  { %v1590_v30 = vmul.f32 1.0614054, %v2034_v25 }
0x1a78   :  { %v2036_v32 = vpop.eup %2035 }
0x1a79   :  { %v1592_v33 = vadd.f32 -1.4531521, %v1590_v30  ;;  %v1591_v34 = vmul.f32 1.0614054, %v2036_v32  ;;  %v2038_v48 = vpop.eup %2037 }
0x1a7a   :  { %v2040_v53 = vpop.eup %2039 }
0x1a7b   :  { %v1594_v36 = vmul.f32 %v2034_v25, %v1592_v33  ;;  %v1593_v37 = vadd.f32 -1.4531521, %v1591_v34 }
0x1a7d   :  { %v1596_v38 = vadd.f32 1.4214138, %v1594_v36  ;;  %v1595_v40 = vmul.f32 %v2036_v32, %v1593_v37 }
0x1a7f   :  { %v1598_v41 = vmul.f32 %v2034_v25, %v1596_v38  ;;  %v1597_v31 = vadd.f32 1.4214138, %v1595_v40 }
0x1a81   :  { %v1600_v42 = vadd.f32 -0.28449672, %v1598_v41  ;;  %v1599_v43 = vmul.f32 %v2036_v32, %v1597_v31 }
0x1a83   :  { %v1602_v26 = vmul.f32 %v2034_v25, %v1600_v42  ;;  %v1601_v28 = vadd.f32 -0.28449672, %v1599_v43 }
0x1a85   :  { %v1604_v44 = vadd.f32 0.2548296, %v1602_v26  ;;  %v1603_v45 = vmul.f32 %v2036_v32, %v1601_v28 }
0x1a87   :  { %v1606_v46 = vmul.f32 %v2034_v25, %v1604_v44  ;;  %v1605_v49 = vadd.f32 0.2548296, %v1603_v45 }
0x1a89   :  { %v1616_v51 = vmul.f32 %v2038_v48, %v1606_v46  ;;  %v1607_v52 = vmul.f32 %v2036_v32, %v1605_v49 }
0x1a8b   :  { %v1618_v54 = vsub.f32 1.0, %v1616_v51  ;;  %v1617_v55 = vmul.f32 %v2040_v53, %v1607_v52 }
0x1a8d   :  { %v1622_v56 = vsub.f32 0.0, %v1618_v54  ;;  %v1619_v35 = vsub.f32 1.0, %v1617_v55 }
0x1a8f   :  { %v1624_v57 = vsel %vm1620_vm12, %v1622_v56, %v1618_v54  ;;  %v1623_v39 = vsub.f32 0.0, %v1619_v35 }
0x1a90   :  { %v1626_v59 = vadd.f32 1.0, %v1624_v57 }
0x1a91   :  { %v1625_v60 = vsel %vm1621_vm13, %v1623_v39, %v1619_v35 }
0x1a92   :  { %v1627_v63 = vadd.f32 1.0, %v1625_v60  ;;  %v1628_v0 = vmul.f32 %v1626_v59, %v1576_v61 }
0x1a94   :  { %v1629_v58 = vmul.f32 %v1627_v63, %v1577_v62 }
0x1a96   :  { %v1634_v1 = vpack.c.bf16 %v1629_v58, %v1628_v0 }
0x1a98   :  { %1954 = vmatmul.mubr.msk.bf16.vlgmr.msra.gmra.mrb[60].mxu1 %vm120_vm2, %v1634_v1 }
0x1b6b   :  { %v1679_v4 = vpop.f32.mrb[60].mxu1 }
0x1b6c   :  { %v1680_v6 = vadd.f32 %v1735_v2, %v1679_v4  ;;  %v1955_v8 = vpop.f32.mrb[61].mxu1 }
0x1b6d   :  { %v1682_v9 = vpop.f32.mrb[62].mxu1 }
0x1b6e   :  { %1688 = vst.msk [vmem:[%s2690_s6] sm:$0xff] %vm120_vm2, %v1680_v6  ;;  %v1683_v11 = vadd.f32 %v1735_v2, %v1682_v9  ;;  %v1956_v47 = vpop.f32.mrb[63].mxu1 }
0x1b70   :  { %1689 = vst.msk [vmem:[%s2690_s6 + $0x8] sm:$0x3] %vm124_vm3, %v1683_v11 }

</bundles_post_ra>
